<compile_context>
chip_gen: v7x
topology: tpu7x:2x2x1
jax: 0.10.0
libtpu: 0.0.40
codegen_flags: <defaults>
</compile_context>

<pallas_src>
import functools

import jax
import jax.numpy as jnp
from jax.experimental import pallas as pl
from jax.experimental.pallas import tpu as pltpu

BN_EPS = 1e-5
_C_IN = 10


def _round_up(x, m):
    return (x + m - 1) // m * m


# --------------------------------------------------------------------------- #
# Pass 1: BN1 statistics.  h = x @ w1 ; accumulate per-channel sum(h), sum(h*h).
# Zero-padded rows of x give h == 0 (no bias in-kernel) and are stats-neutral.
# --------------------------------------------------------------------------- #
def _bn1_stats_kernel(x_ref, w1_ref, sum_ref, sq_ref):
    @pl.when(pl.program_id(0) == 0)
    def _init():
        sum_ref[...] = jnp.zeros_like(sum_ref)
        sq_ref[...] = jnp.zeros_like(sq_ref)

    h = jnp.dot(x_ref[...], w1_ref[...], preferred_element_type=jnp.float32)
    sum_ref[...] += jnp.sum(h, axis=0, keepdims=True)
    sq_ref[...] += jnp.sum(h * h, axis=0, keepdims=True)


# --------------------------------------------------------------------------- #
# Pass 2: BN2 statistics.  z = relu(x @ w1_eff + shift1) ; h2 = z @ w2 ;
# accumulate per-channel sum(h2), sum(h2*h2).  Zero-padded rows give
# z = relu(shift1) != 0 in general, so they are masked when padding exists.
# --------------------------------------------------------------------------- #
def _bn2_stats_kernel(x_ref, w1_ref, shift1_ref, w2_ref, sum_ref, sq_ref, *,
                      n_valid, block_rows, needs_mask):
    i = pl.program_id(0)

    @pl.when(i == 0)
    def _init():
        sum_ref[...] = jnp.zeros_like(sum_ref)
        sq_ref[...] = jnp.zeros_like(sq_ref)

    h = jnp.dot(x_ref[...], w1_ref[...], preferred_element_type=jnp.float32)
    z = jnp.maximum(h + shift1_ref[...], 0.0)
    h2 = jnp.dot(z.astype(jnp.bfloat16), w2_ref[...],
                 preferred_element_type=jnp.float32)
    if needs_mask:  # trace-time branch; only emitted when N % block_rows != 0
        row = i * block_rows + jax.lax.broadcasted_iota(
            jnp.int32, (block_rows, 1), 0)
        h2 = jnp.where(row < n_valid, h2, 0.0)
    sum_ref[...] += jnp.sum(h2, axis=0, keepdims=True)
    sq_ref[...] += jnp.sum(h2 * h2, axis=0, keepdims=True)


# --------------------------------------------------------------------------- #
# Pass 3: apply.  out = relu((relu(x @ w1_eff + shift1) @ w2) * scale2 + shift2)
# --------------------------------------------------------------------------- #
def _apply_kernel(x_ref, w1_ref, shift1_ref, w2_ref, scale2_ref, shift2_ref,
                  o_ref):
    h = jnp.dot(x_ref[...], w1_ref[...], preferred_element_type=jnp.float32)
    z = jnp.maximum(h + shift1_ref[...], 0.0)
    h2 = jnp.dot(z.astype(jnp.bfloat16), w2_ref[...],
                 preferred_element_type=jnp.float32)
    o_ref[...] = jnp.maximum(h2 * scale2_ref[...] + shift2_ref[...],
                             0.0).astype(o_ref.dtype)


def pos_embedding(grouped_xyz, center_xyz, knn_dist, params, *,
                  block_rows=1024, out_dtype=jnp.float32):
    """grouped_xyz [B,npoint,k,3], center_xyz [B,npoint,3], knn_dist [B,npoint,k]
       -> [B, npoint, k, D_pos].  Training-mode BatchNorm (batch statistics)."""
    w1, _b1, g1, be1, w2, _b2, g2, be2 = params   # conv biases cancel under BN
    B, npoint, k_num, _ = grouped_xyz.shape
    D_hid, D_pos = w1.shape[1], w2.shape[1]
    N = B * npoint * k_num

    # ---- feature construction (broadcast / subtract / concat): left to XLA ----
    center = jnp.broadcast_to(center_xyz[:, :, None, :], (B, npoint, k_num, 3))
    feat = jnp.concatenate([center, grouped_xyz, grouped_xyz - center,
                            knn_dist[..., None]], axis=-1)
    x = feat.reshape(N, _C_IN).astype(jnp.float32)

    # ---- row tiling (zero-pad N up to a whole number of tiles) ----
    tn = min(block_rows, _round_up(N, 8))
    n_pad = _round_up(N, tn)
    if n_pad != N:
        x = jnp.pad(x, ((0, n_pad - N), (0, 0)))
    num_tiles = n_pad // tn
    needs_mask = n_pad != N

    # ---- lane-dense hidden dim: pad D_hid up to a multiple of 128 ----
    dh = _round_up(D_hid, 128)
    w1p = jnp.zeros((_C_IN, dh), jnp.float32).at[:, :D_hid].set(
        w1.astype(jnp.float32))
    g1p = jnp.zeros((dh,), jnp.float32).at[:D_hid].set(g1.astype(jnp.float32))
    be1p = jnp.zeros((dh,), jnp.float32).at[:D_hid].set(be1.astype(jnp.float32))
    w2p = jnp.zeros((dh, D_pos), jnp.float32).at[:D_hid, :].set(
        w2.astype(jnp.float32))

    # ---- VMEM budget (double-buffered x/out tiles + resident weights) ----
    footprint = 4 * (2 * tn * 128 + 3 * tn * dh + 3 * tn * D_pos
                     + _C_IN * dh + dh * D_pos + 8 * (dh + D_pos))
    vmem_bytes = int(min(max(2 * footprint, 16 * 1024 * 1024),
                         48 * 1024 * 1024))

    row_spec = pl.BlockSpec((tn, _C_IN), lambda i: (i, 0))
    full = lambda shape: pl.BlockSpec(shape, lambda i: (0, 0))
    acc_params = pltpu.CompilerParams(dimension_semantics=("arbitrary",),
                                      vmem_limit_bytes=vmem_bytes)

    # ---------------- pass 1: BN1 batch statistics ----------------
    sum1, sq1 = pl.pallas_call(
        _bn1_stats_kernel,
        out_shape=(jax.ShapeDtypeStruct((1, dh), jnp.float32),
                   jax.ShapeDtypeStruct((1, dh), jnp.float32)),
        grid=(num_tiles,),
        in_specs=[row_spec, full((_C_IN, dh))],
        out_specs=[full((1, dh)), full((1, dh))],
        compiler_params=acc_params,
    )(x, w1p)

    inv_n = 1.0 / N                                    # true N, not padded
    mean1 = sum1[0] * inv_n
    var1 = jnp.maximum(sq1[0] * inv_n - mean1 * mean1, 0.0)
    scale1 = g1p * jax.lax.rsqrt(var1 + BN_EPS)        # gamma folded into rsqrt
    shift1 = (be1p - mean1 * scale1)[None, :]          # [1, dh]
    w1_eff = w1p * scale1[None, :]                     # fold BN1 scale into conv1
    w2_bf16 = w2p.astype(jnp.bfloat16)                 # bf16 operand for matmul 2

    # ---------------- pass 2: BN2 batch statistics ----------------
    sum2, sq2 = pl.pallas_call(
        functools.partial(_bn2_stats_kernel, n_valid=N, block_rows=tn,
                          needs_mask=needs_mask),
        out_shape=(jax.ShapeDtypeStruct((1, D_pos), jnp.float32),
                   jax.ShapeDtypeStruct((1, D_pos), jnp.float32)),
        grid=(num_tiles,),
        in_specs=[row_spec, full((_C_IN, dh)), full((1, dh)), full((dh, D_pos))],
        out_specs=[full((1, D_pos)), full((1, D_pos))],
        compiler_params=acc_params,
    )(x, w1_eff, shift1, w2_bf16)

    mean2 = sum2[0] * inv_n
    var2 = jnp.maximum(sq2[0] * inv_n - mean2 * mean2, 0.0)
    scale2 = (g2.astype(jnp.float32) * jax.lax.rsqrt(var2 + BN_EPS))[None, :]
    shift2 = (be2.astype(jnp.float32) - mean2 * scale2[0])[None, :]

    # ------- pass 3: normalize + ReLU + write (independent tiles, parallel) ----
    flops = 2 * n_pad * (_C_IN * dh + dh * D_pos) + 6 * n_pad * (dh + D_pos)
    out = pl.pallas_call(
        _apply_kernel,
        out_shape=jax.ShapeDtypeStruct((n_pad, D_pos), out_dtype),
        grid=(num_tiles,),
        in_specs=[row_spec, full((_C_IN, dh)), full((1, dh)), full((dh, D_pos)),
                  full((1, D_pos)), full((1, D_pos))],
        out_specs=pl.BlockSpec((tn, D_pos), lambda i: (i, 0)),
        compiler_params=pltpu.CompilerParams(
            dimension_semantics=("parallel",), vmem_limit_bytes=vmem_bytes),
        cost_estimate=pl.CostEstimate(
            flops=flops, transcendentals=0,
            bytes_accessed=4 * n_pad * _C_IN + 2 * dh * D_pos
            + jnp.dtype(out_dtype).itemsize * n_pad * D_pos),
    )(x, w1_eff, shift1, w2_bf16, scale2, shift2)

    return out[:N].reshape(B, npoint, k_num, D_pos)


def init_params(key, d_pos):
    """Synthetic parameters matching Conv2d(1x1)/BatchNorm2d shapes.
    Conv weights stored as [C_in, C_out] (transposed vs torch's [out,in,1,1])."""
    d_hid = d_pos // 2
    k1, k2, k3, k4, k5, k6, k7, k8 = jax.random.split(key, 8)
    w1 = jax.random.normal(k1, (10, d_hid), jnp.float32) * 0.1
    b1 = jax.random.normal(k2, (d_hid,), jnp.float32) * 0.1
    g1 = 1.0 + 0.1 * jax.random.normal(k3, (d_hid,), jnp.float32)
    be1 = 0.1 * jax.random.normal(k4, (d_hid,), jnp.float32)
    w2 = jax.random.normal(k5, (d_hid, d_pos), jnp.float32) * 0.1
    b2 = jax.random.normal(k6, (d_pos,), jnp.float32) * 0.1
    g2 = 1.0 + 0.1 * jax.random.normal(k7, (d_pos,), jnp.float32)
    be2 = 0.1 * jax.random.normal(k8, (d_pos,), jnp.float32)
    return (w1, b1, g1, be1, w2, b2, g2, be2)


def _reference(grouped_xyz, center_xyz, knn_dist, params):
    """Pure-JAX f32 reference faithful to the PyTorch forward (biases included)."""
    w1, b1, g1, be1, w2, b2, g2, be2 = params
    B, npoint, k_num, _ = grouped_xyz.shape
    center = jnp.broadcast_to(center_xyz[:, :, None, :], (B, npoint, k_num, 3))
    feat = jnp.concatenate([center, grouped_xyz, grouped_xyz - center,
                            knn_dist[..., None]], axis=-1)
    x = feat.reshape(-1, 10)

    def bn(h, g, be):
        m = jnp.mean(h, axis=0, keepdims=True)
        v = jnp.mean((h - m) ** 2, axis=0, keepdims=True)
        return (h - m) / jnp.sqrt(v + BN_EPS) * g + be

    h = jnp.maximum(bn(x @ w1 + b1, g1, be1), 0.0)
    h = jnp.maximum(bn(h @ w2 + b2, g2, be2), 0.0)
    return h.reshape(B, npoint, k_num, -1)


if __name__ == "__main__":
    key = jax.random.PRNGKey(0)
    kg, kc, kd, kp = jax.random.split(key, 4)

    B, NPOINT, K_NUM, D_POS = 2, 16, 8, 128   # N = 256 rows; D_hid = 64 -> padded 128
    grouped_xyz = jax.random.normal(kg, (B, NPOINT, K_NUM, 3), jnp.float32)
    center_xyz = jax.random.normal(kc, (B, NPOINT, 3), jnp.float32)
    knn_dist = jax.random.uniform(kd, (B, NPOINT, K_NUM), jnp.float32)
    params = init_params(kp, D_POS)

    # block_rows=128 -> 2 row tiles, exercising the pipelined/accumulator path.
    fn = jax.jit(functools.partial(pos_embedding, block_rows=128))
    out = fn(grouped_xyz, center_xyz, knn_dist, params)
    jax.block_until_ready(out)

    ref = _reference(grouped_xyz, center_xyz, knn_dist, params)
    assert out.shape == (B, NPOINT, K_NUM, D_POS)
    assert out.dtype == jnp.float32
    # Tolerance covers the bf16 operands on the second (dominant) matmul; the
    # conv-bias / BN batch-mean cancellation is exact.
    assert jnp.allclose(out, ref, atol=3e-2, rtol=3e-2), "mismatch vs reference"

    print("KERNEL_OK")
</pallas_src>

<mosaic_0001>
module attributes {stable_mosaic.version = 11 : i64} {
  func.func @_bn1_stats_kernel(%arg0: i32, %arg1: memref<128x10xf32, #tpu.memory_space<vmem>>, %arg2: memref<10x128xf32, #tpu.memory_space<vmem>>, %arg3: memref<1x128xf32, #tpu.memory_space<vmem>>, %arg4: memref<1x128xf32, #tpu.memory_space<vmem>>) attributes {dimension_semantics = [#tpu.dimension_semantics<arbitrary>], iteration_bounds = array<i64: 2>, scalar_prefetch = 0 : i64, scratch_operands = 0 : i64, tpu.core_type = #tpu.core_type<tc>, window_params = [{transform_indices = @transform_0, window_bounds = array<i64: 128, 10>}, {pipeline_mode = #tpu.pipeline_mode<synchronous>, transform_indices = @transform_1, window_bounds = array<i64: 10, 128>}, {pipeline_mode = #tpu.pipeline_mode<synchronous>, transform_indices = @transform_2, window_bounds = array<i64: 1, 128>}, {pipeline_mode = #tpu.pipeline_mode<synchronous>, transform_indices = @transform_3, window_bounds = array<i64: 1, 128>}]} {
    %c0_i32 = arith.constant 0 : i32
    %0 = arith.cmpi eq, %arg0, %c0_i32 : i32
    %1 = arith.extui %0 : i1 to i32
    %c0_i32_0 = arith.constant 0 : i32
    %2 = arith.cmpi ne, %1, %c0_i32_0 : i32
    scf.if %2 {
      %cst_14 = arith.constant 0.000000e+00 : f32
      %17 = vector.broadcast %cst_14 : f32 to vector<1x128xf32>
      %c0_15 = arith.constant 0 : index
      %c0_16 = arith.constant 0 : index
      %18 = vector.load %arg3[%c0_15, %c0_16] : memref<1x128xf32, #tpu.memory_space<vmem>>, vector<1x128xf32>
      tpu.vector_store %arg3[%c0_15, %c0_16], %17 {strides = array<i32>} : memref<1x128xf32, #tpu.memory_space<vmem>>, vector<1x128xf32>,
      %cst_17 = arith.constant 0.000000e+00 : f32
      %19 = vector.broadcast %cst_17 : f32 to vector<1x128xf32>
      %c0_18 = arith.constant 0 : index
      %c0_19 = arith.constant 0 : index
      %20 = vector.load %arg4[%c0_18, %c0_19] : memref<1x128xf32, #tpu.memory_space<vmem>>, vector<1x128xf32>
      tpu.vector_store %arg4[%c0_18, %c0_19], %19 {strides = array<i32>} : memref<1x128xf32, #tpu.memory_space<vmem>>, vector<1x128xf32>,
    } else {
    }
    %c0 = arith.constant 0 : index
    %c0_1 = arith.constant 0 : index
    %3 = vector.load %arg1[%c0, %c0_1] : memref<128x10xf32, #tpu.memory_space<vmem>>, vector<128x10xf32>
    %c0_2 = arith.constant 0 : index
    %c0_3 = arith.constant 0 : index
    %4 = vector.load %arg2[%c0_2, %c0_3] : memref<10x128xf32, #tpu.memory_space<vmem>>, vector<10x128xf32>
    %cst = arith.constant dense<0.000000e+00> : vector<128x128xf32>
    %5 = tpu.matmul %3, %4, %cst {dimension_numbers = #tpu.dot_dimension_numbers<[1], [0], [0], [1], [0, 0, 1, 1], [], []>} : vector<128x10xf32>, vector<10x128xf32>, vector<128x128xf32> -> vector<128x128xf32>
    %c0_4 = arith.constant 0 : index
    %c0_5 = arith.constant 0 : index
    %6 = vector.load %arg3[%c0_4, %c0_5] : memref<1x128xf32, #tpu.memory_space<vmem>>, vector<1x128xf32>
    %cst_6 = arith.constant dense<0.000000e+00> : vector<128xf32>
    %7 = vector.multi_reduction <add>, %5, %cst_6 [0] : vector<128x128xf32> to vector<128xf32>
    %8 = vector.shape_cast %7 : vector<128xf32> to vector<1x128xf32>
    %9 = arith.addf %6, %8 : vector<1x128xf32>
    %c0_7 = arith.constant 0 : index
    %c0_8 = arith.constant 0 : index
    %10 = vector.load %arg3[%c0_7, %c0_8] : memref<1x128xf32, #tpu.memory_space<vmem>>, vector<1x128xf32>
    tpu.vector_store %arg3[%c0_7, %c0_8], %9 {strides = array<i32>} : memref<1x128xf32, #tpu.memory_space<vmem>>, vector<1x128xf32>,
    %c0_9 = arith.constant 0 : index
    %c0_10 = arith.constant 0 : index
    %11 = vector.load %arg4[%c0_9, %c0_10] : memref<1x128xf32, #tpu.memory_space<vmem>>, vector<1x128xf32>
    %12 = arith.mulf %5, %5 : vector<128x128xf32>
    %cst_11 = arith.constant dense<0.000000e+00> : vector<128xf32>
    %13 = vector.multi_reduction <add>, %12, %cst_11 [0] : vector<128x128xf32> to vector<128xf32>
    %14 = vector.shape_cast %13 : vector<128xf32> to vector<1x128xf32>
    %15 = arith.addf %11, %14 : vector<1x128xf32>
    %c0_12 = arith.constant 0 : index
    %c0_13 = arith.constant 0 : index
    %16 = vector.load %arg4[%c0_12, %c0_13] : memref<1x128xf32, #tpu.memory_space<vmem>>, vector<1x128xf32>
    tpu.vector_store %arg4[%c0_12, %c0_13], %15 {strides = array<i32>} : memref<1x128xf32, #tpu.memory_space<vmem>>, vector<1x128xf32>,
    return
  }
  func.func @transform_0(%arg0: i32) -> (i32, i32) {
    %c0_i32 = arith.constant 0 : i32
    %c0_i32_0 = arith.constant 0 : i32
    return %arg0, %c0_i32 : i32, i32
  }
  func.func @transform_1(%arg0: i32) -> (i32, i32) {
    %c0_i32 = arith.constant 0 : i32
    %c0_i32_0 = arith.constant 0 : i32
    %c0_i32_1 = arith.constant 0 : i32
    return %c0_i32, %c0_i32_0 : i32, i32
  }
  func.func @transform_2(%arg0: i32) -> (i32, i32) {
    %c0_i32 = arith.constant 0 : i32
    %c0_i32_0 = arith.constant 0 : i32
    %c0_i32_1 = arith.constant 0 : i32
    return %c0_i32, %c0_i32_0 : i32, i32
  }
  func.func @transform_3(%arg0: i32) -> (i32, i32) {
    %c0_i32 = arith.constant 0 : i32
    %c0_i32_0 = arith.constant 0 : i32
    %c0_i32_1 = arith.constant 0 : i32
    return %c0_i32, %c0_i32_0 : i32, i32
  }
}

module attributes {stable_mosaic.version = 11 : i64} {
  func.func @_bn2_stats_kernel(%arg0: i32, %arg1: memref<128x10xf32, #tpu.memory_space<vmem>>, %arg2: memref<10x128xf32, #tpu.memory_space<vmem>>, %arg3: memref<1x128xf32, #tpu.memory_space<vmem>>, %arg4: memref<128x128xbf16, #tpu.memory_space<vmem>>, %arg5: memref<1x128xf32, #tpu.memory_space<vmem>>, %arg6: memref<1x128xf32, #tpu.memory_space<vmem>>) attributes {dimension_semantics = [#tpu.dimension_semantics<arbitrary>], iteration_bounds = array<i64: 2>, scalar_prefetch = 0 : i64, scratch_operands = 0 : i64, tpu.core_type = #tpu.core_type<tc>, window_params = [{transform_indices = @transform_0, window_bounds = array<i64: 128, 10>}, {pipeline_mode = #tpu.pipeline_mode<synchronous>, transform_indices = @transform_1, window_bounds = array<i64: 10, 128>}, {pipeline_mode = #tpu.pipeline_mode<synchronous>, transform_indices = @transform_2, window_bounds = array<i64: 1, 128>}, {pipeline_mode = #tpu.pipeline_mode<synchronous>, transform_indices = @transform_3, window_bounds = array<i64: 128, 128>}, {pipeline_mode = #tpu.pipeline_mode<synchronous>, transform_indices = @transform_4, window_bounds = array<i64: 1, 128>}, {pipeline_mode = #tpu.pipeline_mode<synchronous>, transform_indices = @transform_5, window_bounds = array<i64: 1, 128>}]} {
    %c0_i32 = arith.constant 0 : i32
    %0 = arith.cmpi eq, %arg0, %c0_i32 : i32
    %1 = arith.extui %0 : i1 to i32
    %c0_i32_0 = arith.constant 0 : i32
    %2 = arith.cmpi ne, %1, %c0_i32_0 : i32
    scf.if %2 {
      %cst_20 = arith.constant 0.000000e+00 : f32
      %25 = vector.broadcast %cst_20 : f32 to vector<1x128xf32>
      %c0_21 = arith.constant 0 : index
      %c0_22 = arith.constant 0 : index
      %26 = vector.load %arg5[%c0_21, %c0_22] : memref<1x128xf32, #tpu.memory_space<vmem>>, vector<1x128xf32>
      tpu.vector_store %arg5[%c0_21, %c0_22], %25 {strides = array<i32>} : memref<1x128xf32, #tpu.memory_space<vmem>>, vector<1x128xf32>,
      %cst_23 = arith.constant 0.000000e+00 : f32
      %27 = vector.broadcast %cst_23 : f32 to vector<1x128xf32>
      %c0_24 = arith.constant 0 : index
      %c0_25 = arith.constant 0 : index
      %28 = vector.load %arg6[%c0_24, %c0_25] : memref<1x128xf32, #tpu.memory_space<vmem>>, vector<1x128xf32>
      tpu.vector_store %arg6[%c0_24, %c0_25], %27 {strides = array<i32>} : memref<1x128xf32, #tpu.memory_space<vmem>>, vector<1x128xf32>,
    } else {
    }
    %c0 = arith.constant 0 : index
    %c0_1 = arith.constant 0 : index
    %3 = vector.load %arg1[%c0, %c0_1] : memref<128x10xf32, #tpu.memory_space<vmem>>, vector<128x10xf32>
    %c0_2 = arith.constant 0 : index
    %c0_3 = arith.constant 0 : index
    %4 = vector.load %arg2[%c0_2, %c0_3] : memref<10x128xf32, #tpu.memory_space<vmem>>, vector<10x128xf32>
    %cst = arith.constant dense<0.000000e+00> : vector<128x128xf32>
    %5 = tpu.matmul %3, %4, %cst {dimension_numbers = #tpu.dot_dimension_numbers<[1], [0], [0], [1], [0, 0, 1, 1], [], []>} : vector<128x10xf32>, vector<10x128xf32>, vector<128x128xf32> -> vector<128x128xf32>
    %c0_4 = arith.constant 0 : index
    %c0_5 = arith.constant 0 : index
    %6 = vector.load %arg3[%c0_4, %c0_5] : memref<1x128xf32, #tpu.memory_space<vmem>>, vector<1x128xf32>
    %7 = vector.broadcast %6 : vector<1x128xf32> to vector<128x128xf32>
    %8 = arith.addf %5, %7 : vector<128x128xf32>
    %cst_6 = arith.constant 0.000000e+00 : f32
    %9 = vector.broadcast %cst_6 : f32 to vector<128x128xf32>
    %10 = arith.maximumf %8, %9 : vector<128x128xf32>
    %11 = arith.truncf %10 : vector<128x128xf32> to vector<128x128xbf16>
    %c0_7 = arith.constant 0 : index
    %c0_8 = arith.constant 0 : index
    %12 = vector.load %arg4[%c0_7, %c0_8] : memref<128x128xbf16, #tpu.memory_space<vmem>>, vector<128x128xbf16>
    %cst_9 = arith.constant dense<0.000000e+00> : vector<128x128xf32>
    %13 = tpu.matmul %11, %12, %cst_9 {dimension_numbers = #tpu.dot_dimension_numbers<[1], [0], [0], [1], [0, 0, 1, 1], [], []>} : vector<128x128xbf16>, vector<128x128xbf16>, vector<128x128xf32> -> vector<128x128xf32>
    %c0_10 = arith.constant 0 : index
    %c0_11 = arith.constant 0 : index
    %14 = vector.load %arg5[%c0_10, %c0_11] : memref<1x128xf32, #tpu.memory_space<vmem>>, vector<1x128xf32>
    %cst_12 = arith.constant dense<0.000000e+00> : vector<128xf32>
    %15 = vector.multi_reduction <add>, %13, %cst_12 [0] : vector<128x128xf32> to vector<128xf32>
    %16 = vector.shape_cast %15 : vector<128xf32> to vector<1x128xf32>
    %17 = arith.addf %14, %16 : vector<1x128xf32>
    %c0_13 = arith.constant 0 : index
    %c0_14 = arith.constant 0 : index
    %18 = vector.load %arg5[%c0_13, %c0_14] : memref<1x128xf32, #tpu.memory_space<vmem>>, vector<1x128xf32>
    tpu.vector_store %arg5[%c0_13, %c0_14], %17 {strides = array<i32>} : memref<1x128xf32, #tpu.memory_space<vmem>>, vector<1x128xf32>,
    %c0_15 = arith.constant 0 : index
    %c0_16 = arith.constant 0 : index
    %19 = vector.load %arg6[%c0_15, %c0_16] : memref<1x128xf32, #tpu.memory_space<vmem>>, vector<1x128xf32>
    %20 = arith.mulf %13, %13 : vector<128x128xf32>
    %cst_17 = arith.constant dense<0.000000e+00> : vector<128xf32>
    %21 = vector.multi_reduction <add>, %20, %cst_17 [0] : vector<128x128xf32> to vector<128xf32>
    %22 = vector.shape_cast %21 : vector<128xf32> to vector<1x128xf32>
    %23 = arith.addf %19, %22 : vector<1x128xf32>
    %c0_18 = arith.constant 0 : index
    %c0_19 = arith.constant 0 : index
    %24 = vector.load %arg6[%c0_18, %c0_19] : memref<1x128xf32, #tpu.memory_space<vmem>>, vector<1x128xf32>
    tpu.vector_store %arg6[%c0_18, %c0_19], %23 {strides = array<i32>} : memref<1x128xf32, #tpu.memory_space<vmem>>, vector<1x128xf32>,
    return
  }
  func.func @transform_0(%arg0: i32) -> (i32, i32) {
    %c0_i32 = arith.constant 0 : i32
    %c0_i32_0 = arith.constant 0 : i32
    return %arg0, %c0_i32 : i32, i32
  }
  func.func @transform_1(%arg0: i32) -> (i32, i32) {
    %c0_i32 = arith.constant 0 : i32
    %c0_i32_0 = arith.constant 0 : i32
    %c0_i32_1 = arith.constant 0 : i32
    return %c0_i32, %c0_i32_0 : i32, i32
  }
  func.func @transform_2(%arg0: i32) -> (i32, i32) {
    %c0_i32 = arith.constant 0 : i32
    %c0_i32_0 = arith.constant 0 : i32
    %c0_i32_1 = arith.constant 0 : i32
    return %c0_i32, %c0_i32_0 : i32, i32
  }
  func.func @transform_3(%arg0: i32) -> (i32, i32) {
    %c0_i32 = arith.constant 0 : i32
    %c0_i32_0 = arith.constant 0 : i32
    %c0_i32_1 = arith.constant 0 : i32
    return %c0_i32, %c0_i32_0 : i32, i32
  }
  func.func @transform_4(%arg0: i32) -> (i32, i32) {
    %c0_i32 = arith.constant 0 : i32
    %c0_i32_0 = arith.constant 0 : i32
    %c0_i32_1 = arith.constant 0 : i32
    return %c0_i32, %c0_i32_0 : i32, i32
  }
  func.func @transform_5(%arg0: i32) -> (i32, i32) {
    %c0_i32 = arith.constant 0 : i32
    %c0_i32_0 = arith.constant 0 : i32
    %c0_i32_1 = arith.constant 0 : i32
    return %c0_i32, %c0_i32_0 : i32, i32
  }
}

module attributes {stable_mosaic.version = 11 : i64} {
  func.func @_apply_kernel(%arg0: i32, %arg1: memref<128x10xf32, #tpu.memory_space<vmem>>, %arg2: memref<10x128xf32, #tpu.memory_space<vmem>>, %arg3: memref<1x128xf32, #tpu.memory_space<vmem>>, %arg4: memref<128x128xbf16, #tpu.memory_space<vmem>>, %arg5: memref<1x128xf32, #tpu.memory_space<vmem>>, %arg6: memref<1x128xf32, #tpu.memory_space<vmem>>, %arg7: memref<128x128xf32, #tpu.memory_space<vmem>>) attributes {dimension_semantics = [#tpu.dimension_semantics<parallel>], iteration_bounds = array<i64: 2>, scalar_prefetch = 0 : i64, scratch_operands = 0 : i64, tpu.core_type = #tpu.core_type<tc>, window_params = [{transform_indices = @transform_0, window_bounds = array<i64: 128, 10>}, {pipeline_mode = #tpu.pipeline_mode<synchronous>, transform_indices = @transform_1, window_bounds = array<i64: 10, 128>}, {pipeline_mode = #tpu.pipeline_mode<synchronous>, transform_indices = @transform_2, window_bounds = array<i64: 1, 128>}, {pipeline_mode = #tpu.pipeline_mode<synchronous>, transform_indices = @transform_3, window_bounds = array<i64: 128, 128>}, {pipeline_mode = #tpu.pipeline_mode<synchronous>, transform_indices = @transform_4, window_bounds = array<i64: 1, 128>}, {pipeline_mode = #tpu.pipeline_mode<synchronous>, transform_indices = @transform_5, window_bounds = array<i64: 1, 128>}, {transform_indices = @transform_6, window_bounds = array<i64: 128, 128>}]} {
    %c0 = arith.constant 0 : index
    %c0_0 = arith.constant 0 : index
    %0 = vector.load %arg1[%c0, %c0_0] : memref<128x10xf32, #tpu.memory_space<vmem>>, vector<128x10xf32>
    %c0_1 = arith.constant 0 : index
    %c0_2 = arith.constant 0 : index
    %1 = vector.load %arg2[%c0_1, %c0_2] : memref<10x128xf32, #tpu.memory_space<vmem>>, vector<10x128xf32>
    %cst = arith.constant dense<0.000000e+00> : vector<128x128xf32>
    %2 = tpu.matmul %0, %1, %cst {dimension_numbers = #tpu.dot_dimension_numbers<[1], [0], [0], [1], [0, 0, 1, 1], [], []>} : vector<128x10xf32>, vector<10x128xf32>, vector<128x128xf32> -> vector<128x128xf32>
    %c0_3 = arith.constant 0 : index
    %c0_4 = arith.constant 0 : index
    %3 = vector.load %arg3[%c0_3, %c0_4] : memref<1x128xf32, #tpu.memory_space<vmem>>, vector<1x128xf32>
    %4 = vector.broadcast %3 : vector<1x128xf32> to vector<128x128xf32>
    %5 = arith.addf %2, %4 : vector<128x128xf32>
    %cst_5 = arith.constant 0.000000e+00 : f32
    %6 = vector.broadcast %cst_5 : f32 to vector<128x128xf32>
    %7 = arith.maximumf %5, %6 : vector<128x128xf32>
    %8 = arith.truncf %7 : vector<128x128xf32> to vector<128x128xbf16>
    %c0_6 = arith.constant 0 : index
    %c0_7 = arith.constant 0 : index
    %9 = vector.load %arg4[%c0_6, %c0_7] : memref<128x128xbf16, #tpu.memory_space<vmem>>, vector<128x128xbf16>
    %cst_8 = arith.constant dense<0.000000e+00> : vector<128x128xf32>
    %10 = tpu.matmul %8, %9, %cst_8 {dimension_numbers = #tpu.dot_dimension_numbers<[1], [0], [0], [1], [0, 0, 1, 1], [], []>} : vector<128x128xbf16>, vector<128x128xbf16>, vector<128x128xf32> -> vector<128x128xf32>
    %c0_9 = arith.constant 0 : index
    %c0_10 = arith.constant 0 : index
    %11 = vector.load %arg5[%c0_9, %c0_10] : memref<1x128xf32, #tpu.memory_space<vmem>>, vector<1x128xf32>
    %12 = vector.broadcast %11 : vector<1x128xf32> to vector<128x128xf32>
    %13 = arith.mulf %10, %12 : vector<128x128xf32>
    %c0_11 = arith.constant 0 : index
    %c0_12 = arith.constant 0 : index
    %14 = vector.load %arg6[%c0_11, %c0_12] : memref<1x128xf32, #tpu.memory_space<vmem>>, vector<1x128xf32>
    %15 = vector.broadcast %14 : vector<1x128xf32> to vector<128x128xf32>
    %16 = arith.addf %13, %15 : vector<128x128xf32>
    %cst_13 = arith.constant 0.000000e+00 : f32
    %17 = vector.broadcast %cst_13 : f32 to vector<128x128xf32>
    %18 = arith.maximumf %16, %17 : vector<128x128xf32>
    %c0_14 = arith.constant 0 : index
    %c0_15 = arith.constant 0 : index
    %19 = vector.load %arg7[%c0_14, %c0_15] : memref<128x128xf32, #tpu.memory_space<vmem>>, vector<128x128xf32>
    tpu.vector_store %arg7[%c0_14, %c0_15], %18 {strides = array<i32>} : memref<128x128xf32, #tpu.memory_space<vmem>>, vector<128x128xf32>,
    return
  }
  func.func @transform_0(%arg0: i32) -> (i32, i32) {
    %c0_i32 = arith.constant 0 : i32
    %c0_i32_0 = arith.constant 0 : i32
    return %arg0, %c0_i32 : i32, i32
  }
  func.func @transform_1(%arg0: i32) -> (i32, i32) {
    %c0_i32 = arith.constant 0 : i32
    %c0_i32_0 = arith.constant 0 : i32
    %c0_i32_1 = arith.constant 0 : i32
    return %c0_i32, %c0_i32_0 : i32, i32
  }
  func.func @transform_2(%arg0: i32) -> (i32, i32) {
    %c0_i32 = arith.constant 0 : i32
    %c0_i32_0 = arith.constant 0 : i32
    %c0_i32_1 = arith.constant 0 : i32
    return %c0_i32, %c0_i32_0 : i32, i32
  }
  func.func @transform_3(%arg0: i32) -> (i32, i32) {
    %c0_i32 = arith.constant 0 : i32
    %c0_i32_0 = arith.constant 0 : i32
    %c0_i32_1 = arith.constant 0 : i32
    return %c0_i32, %c0_i32_0 : i32, i32
  }
  func.func @transform_4(%arg0: i32) -> (i32, i32) {
    %c0_i32 = arith.constant 0 : i32
    %c0_i32_0 = arith.constant 0 : i32
    %c0_i32_1 = arith.constant 0 : i32
    return %c0_i32, %c0_i32_0 : i32, i32
  }
  func.func @transform_5(%arg0: i32) -> (i32, i32) {
    %c0_i32 = arith.constant 0 : i32
    %c0_i32_0 = arith.constant 0 : i32
    %c0_i32_1 = arith.constant 0 : i32
    return %c0_i32, %c0_i32_0 : i32, i32
  }
  func.func @transform_6(%arg0: i32) -> (i32, i32) {
    %c0_i32 = arith.constant 0 : i32
    %c0_i32_0 = arith.constant 0 : i32
    return %arg0, %c0_i32 : i32, i32
  }
}

</mosaic_0001>

<bundles_post_ra>
// kernel: pos_embedding.5
= control target key start
LH: loop header
LB: loop body
LE: loop exit
PB: predicated region body
PF: predicated region fallthrough
CT: control target
= control target key end

     0   :  { %11 = vsyncpa [#allocation3], 0  ;;  %s1360_s0 = inlined_call_operand.vmem [shape: f32[256,10], index: 0, kind: input, shape index: {}]   ;;  %s1361_s1 = inlined_call_operand.vmem [shape: f32[10,128], index: 1, kind: input, shape index: {}]   ;;  %s1362_s2 = inlined_call_operand.vmem [shape: f32[1,128], index: 2, kind: input, shape index: {}]   ;;  %s1363_s3 = inlined_call_operand.vmem [shape: bf16[128,128], index: 3, kind: input, shape index: {}]   ;;  %s1364_s4 = inlined_call_operand.vmem [shape: f32[1,128], index: 4, kind: input, shape index: {}]   ;;  %s1365_s5 = inlined_call_operand.vmem [shape: f32[1,128], index: 5, kind: input, shape index: {}]   ;;  %s1366_s6 = inlined_call_operand.hbm [shape: f32[256,128], index: 6, kind: output, shape index: {}]  }
   0x1   :  { %13 = vsyncpa [#allocation3 + $0x1], 0  ;;  %s1126_s21 = smov 0   ;;  %s1128_s22 = smov 0  }
   0x2   :  { %s1130_s23 = smov 0   ;;  %s1132_s24 = smov 0  }
   0x3 LB: > { %s1147_s25 = sadd.s32 4294967295, %s1085_s24   ;;  %s816_s26 = sadd.s32 4294967294, %s1085_s24   ;;  %s1085_s24 = sphi %s1132_s24, %s1372_s24   ;;  %s1081_s23 = sphi %s1130_s23, %s1371_s23   ;;  %s1077_s22 = sphi %s1128_s22, %s1370_s22   ;;  %s1073_s21 = sphi %s1126_s21, %s1369_s21  }
   0x4   : > { %s1151_s27 = sadd.s32 1, %s1085_s24   ;;  %s157_s28 = sadd.s32 1, %s1081_s23 }
   0x5   : > { %s154_s29 = ssub.s32 %s1085_s24, %s1151_s27  ;;  %p167_p0 = scmp.ne.s32.totalorder %s1081_s23, %s1077_s22 }
   0x6   : > { %p155_p1 = scmp.eq.s32.totalorder %s154_s29, 0  ;;  %p168_p2 = scmp.eq.s32.totalorder %s1147_s25, 1 }
   0x7   : > { %p173_p3 = scmp.ne.s32.totalorder %s1077_s22, %s1073_s21  ;;  %p174_p4 = scmp.eq.s32.totalorder %s816_s26, 1 }
   0x8   : > { %s1162_s30 = scalar_select %p155_p1, %s1081_s23, %s157_s28  }
   0x9   : > { %p1164_p5 = por %p168_p2, %p167_p0  ;;  %p1168_p6 = por %p174_p4, %p173_p3 }
   0xa   : > { %p819_p7 = scmp.ge.s32.totalorder %s1085_s24, 1  ;;  %p216_p8 = scmp.lt.s32.totalorder %s1085_s24, 3 }
   0xc   : > { %p217_p9 = pnand %p819_p7, %p216_p8 }
   0xd   : > { %v270_v0 = vld [vmem:[%s1361_s1] sm:$0xff] (!%p217_p9)  ;;  %v271_v1 = vld [vmem:[%s1361_s1 + $0x8] sm:$0x3] (!%p217_p9)  ;;  %vm328_vm0 = vcmask (!%p217_p9), 1041408   ;;  %s821_s13 = sshll.u32 (!%p217_p9), %s1147_s25, 4  ;;  %vm1087_vm1 = vmmov (!%p217_p9), 1  }
   0xe   : > { %220 = sbr.rel (%p217_p9) target bundleno = 509 (0x1fd), region = 44  ;;  %v951_v2 = vpack.c.bf16 (!%p217_p9), %v271_v1, %v270_v0  ;;  %vm952_vm2 = vmpackc.low (!%p217_p9), %vm328_vm0, %vm1087_vm1  ;;  %p247_p10 = scmp.lt.s32.totalorder (!%p217_p9), %s821_s13, 31  ;;  %v1015_v3 = vld [vmem:[%s1363_s3] sm:$0xff] (!%p217_p9)   ;;  %v1016_v4 = vld [vmem:[%s1363_s3 + $0x8] sm:$0xff] (!%p217_p9)   ;;  %vm279_vm3 = vcmask (!%p217_p9), 80896  }
   0xf   : > { %957 = vmatprep.subr.bf16.mxu1 (!%p217_p9), %v1015_v3  ;;  %v1017_v8 = vld [vmem:[%s1363_s3 + $0x10] sm:$0xff] (!%p217_p9)   ;;  %v1018_v11 = vld [vmem:[%s1363_s3 + $0x18] sm:$0xff] (!%p217_p9)   ;;  %v1019_v14 = vld [vmem:[%s1363_s3 + $0x20] sm:$0xff] (!%p217_p9)   ;;  %s1088_s19 = smov (!%p217_p9), [#allocation2]  }
  0x10   : > { %953 = vmatprep.subr.msk.bf16.mxu0 (!%p217_p9), %vm952_vm2, %v951_v2  ;;  %965 = vmatpush3.bf16.msra.mxu1 (!%p217_p9), %v1015_v3  ;;  %v1020_v24 = vld [vmem:[%s1363_s3 + $0x28] sm:$0xff] (!%p217_p9)   ;;  %v1021_v25 = vld [vmem:[%s1363_s3 + $0x30] sm:$0xff] (!%p217_p9)   ;;  %v1022_v26 = vld [vmem:[%s1363_s3 + $0x38] sm:$0xff] (!%p217_p9)   ;;  %s1027_s20 = sshll.u32 (!%p217_p9), %s1088_s19, 4  ;;  %s1028_s20 = int_to_ptr.vmem [resolvable:$false] %s1027_s20 }
  0x11   : > { %956 = vmatpush3.bf16.msk.msra.mxu0 (!%p217_p9), %vm952_vm2, %v951_v2  ;;  %958 = vmatprep.subr.bf16.mxu1 (!%p217_p9), %v1016_v4  ;;  %v823_v27 = vld [vmem:[%s1362_s2] ss:$0 sm:$0xff] (!%p217_p9)  ;;  %s1029_s28 = scalar_lea.vmem (!%p217_p9), %s1028_s20, 4096 }
  0x12   : > { %919 = vmatprep.subr.bf16.mxu0 (!%p217_p9), %v1015_v3 }
  0x14   : > { %966 = vmatpush3.bf16.msra.mxu1 (!%p217_p9), %v1016_v4 }
  0x15   : > { %s1374_s13 = smov (!%p247_p10, %s821_s13), 31  ;;  %959 = vmatprep.subr.bf16.mxu1 %v1017_v8 }
  0x16   : > { %s822_s18 = sshll.u32 %s1374_s13, 3  ;;  %s856_s13 = sshll.u32 %s1147_s25, 11 }
  0x17   : > { %s1190_s26 = scalar_lea.vmem %s1360_s0, %s822_s18  ;;  %s1310_s17 = scalar_lea.hbm %s1366_s6, %s856_s13 }
  0x18   : > { %v254_v5 = vld [vmem:[%s1190_s26] sm:$0xff]  ;;  %v255_v6 = vld [vmem:[%s1190_s26 + $0x8] sm:$0xff]  ;;  %v256_v7 = vld [vmem:[%s1190_s26 + $0x10] sm:$0xff]  ;;  %967 = vmatpush3.bf16.msra.mxu1 %v1017_v8 }
  0x19   : > { %895 = vmatprep.mubr.msk.f32.mxu0 %vm279_vm3, %v254_v5  ;;  %v257_v9 = vld [vmem:[%s1190_s26 + $0x18] sm:$0xff]  ;;  %v258_v10 = vld [vmem:[%s1190_s26 + $0x20] sm:$0xff]  ;;  %v259_v12 = vld [vmem:[%s1190_s26 + $0x28] sm:$0xff]  ;;  %960 = vmatprep.subr.bf16.mxu1 %v1018_v11 }
  0x1a   : > { %896 = vmatmul.mubr.msk.f32.vlgmr.msra.gmra.mrb[0].mxu0 %vm279_vm3, %v255_v6  ;;  %v260_v13 = vld [vmem:[%s1190_s26 + $0x30] sm:$0xff]  ;;  %v261_v15 = vld [vmem:[%s1190_s26 + $0x38] sm:$0xff]  ;;  %v262_v16 = vld [vmem:[%s1190_s26 + $0x40] sm:$0xff] }
  0x1b   : > { %898 = vmatprep.mubr.msk.f32.mxu0 %vm279_vm3, %v256_v7  ;;  %920 = vmatpush3.bf16.msra.mxu0 %v1015_v3  ;;  %v263_v17 = vld [vmem:[%s1190_s26 + $0x48] sm:$0xff]  ;;  %v264_v18 = vld [vmem:[%s1190_s26 + $0x50] sm:$0xff]  ;;  %v265_v19 = vld [vmem:[%s1190_s26 + $0x58] sm:$0xff] }
  0x1c   : > { %921 = vmatprep.subr.bf16.mxu0 %v1016_v4  ;;  %968 = vmatpush3.bf16.msra.mxu1 %v1018_v11  ;;  %v266_v20 = vld [vmem:[%s1190_s26 + $0x60] sm:$0xff]  ;;  %v267_v21 = vld [vmem:[%s1190_s26 + $0x68] sm:$0xff]  ;;  %v268_v22 = vld [vmem:[%s1190_s26 + $0x70] sm:$0xff] }
  0x1d   : > { %961 = vmatprep.subr.bf16.mxu1 %v1019_v14  ;;  %v269_v23 = vld [vmem:[%s1190_s26 + $0x78] sm:$0xff]  ;;  %s243_s26 = sand.u32 1, %s1077_s22  }
  0x1e   : > { %899 = vmatmul.mubr.msk.f32.gmra.mrb[2].mxu0 %vm279_vm3, %v257_v9  ;;  %s820_s11 = sshll.u32 %s243_s26, 7  ;;  %s1319_s25 = scalar_lea.sflag [#allocation3], %s243_s26 }
  0x1f   : > { %901 = vmatprep.mubr.msk.f32.mxu0 %vm279_vm3, %v258_v10  ;;  %922 = vmatpush3.bf16.msra.mxu0 %v1016_v4  ;;  %s1266_s12 = scalar_lea.vmem [#allocation2], %s820_s11 }
  0x20   : > { %923 = vmatprep.subr.bf16.mxu0 %v1017_v8  ;;  %969 = vmatpush3.bf16.msra.mxu1 %v1019_v14  ;;  %s754_s14 = sshll.u32 %s1266_s12, 4  ;;  %s1312_s14 = int_to_ptr.vmem [resolvable:$true] %s754_s14 }
  0x21   : > { %962 = vmatprep.subr.bf16.mxu1 %v1020_v24  ;;  %s1023_s18 = scalar_lea.vmem %s1312_s14, 2048  ;;  %p1030_p0 = scmp.lt.s32.totalorder %s1312_s14, %s1028_s20 }
  0x22   : > { %902 = vmatmul.mubr.msk.f32.gmra.mrb[4].mxu0 %vm279_vm3, %v259_v12  ;;  %p1024_p11 = scmp.ne.s32.totalorder %s1312_s14, %s1023_s18  ;;  %p1031_p1 = scmp.lt.s32.totalorder %s1029_s28, %s1023_s18 }
  0x23   : > { %904 = vmatprep.mubr.msk.f32.mxu0 %vm279_vm3, %v260_v13  ;;  %924 = vmatpush3.bf16.msra.mxu0 %v1017_v8 }
  0x24   : > { %925 = vmatprep.subr.bf16.mxu0 %v1018_v11  ;;  %970 = vmatpush3.bf16.msra.mxu1 %v1020_v24  ;;  %p1025_p12 = pnand %p1024_p11, %p1164_p5  ;;  %p1032_p2 = por %p1031_p1, %p1030_p0 }
  0x25   : > { %963 = vmatprep.subr.bf16.mxu1 %v1021_v25 }
  0x26   : > { %905 = vmatmul.mubr.msk.f32.gmra.mrb[6].mxu0 %vm279_vm3, %v261_v15  ;;  %p1026_p13 = pneg %p1025_p12 }
  0x27   : > { %907 = vmatprep.mubr.msk.f32.mxu0 %vm279_vm3, %v262_v16  ;;  %926 = vmatpush3.bf16.msra.mxu0 %v1018_v11 }
  0x28   : > { %927 = vmatprep.subr.bf16.mxu0 %v1019_v14  ;;  %971 = vmatpush3.bf16.msra.mxu1 %v1021_v25  ;;  %p1033_p3 = pnand %p1032_p2, %p1026_p13 }
  0x29   : > { %964 = vmatprep.subr.bf16.mxu1 %v1022_v26 }
  0x2a   : > { %908 = vmatmul.mubr.msk.f32.gmra.mrb[8].mxu0 %vm279_vm3, %v263_v17 }
  0x2b   : > { %910 = vmatprep.mubr.msk.f32.mxu0 %vm279_vm3, %v264_v18  ;;  %928 = vmatpush3.bf16.msra.mxu0 %v1019_v14 }
  0x2c   : > { %929 = vmatprep.subr.bf16.mxu0 %v1020_v24  ;;  %972 = vmatpush3.bf16.msra.mxu1 %v1022_v26 }
  0x2e   : > { %911 = vmatmul.mubr.msk.f32.gmra.mrb[10].mxu0 %vm279_vm3, %v265_v19 }
  0x2f   : > { %913 = vmatprep.mubr.msk.f32.mxu0 %vm279_vm3, %v266_v20  ;;  %930 = vmatpush3.bf16.msra.mxu0 %v1020_v24  ;;  %v1249_v20 = vld [vmem:[%s1364_s4] ss:$0 sm:$0xff] }
  0x30   : > { %931 = vmatprep.subr.bf16.mxu0 %v1021_v25 }
  0x32   : > { %914 = vmatmul.mubr.msk.f32.gmra.mrb[12].mxu0 %vm279_vm3, %v267_v21 }
  0x33   : > { %916 = vmatprep.mubr.msk.f32.mxu0 %vm279_vm3, %v268_v22  ;;  %932 = vmatpush3.bf16.msra.mxu0 %v1021_v25  ;;  %v1254_v22 = vld [vmem:[%s1365_s5] ss:$0 sm:$0xff] }
  0x34   : > { %933 = vmatprep.subr.bf16.mxu0 %v1022_v26 }
  0x36   : > { %917 = vmatmul.mubr.msk.f32.gmra.mrb[14].mxu0 %vm279_vm3, %v269_v23 }
  0x37   : > { %934 = vmatpush3.bf16.msra.mxu0 %v1022_v26 }
  0xed   : > { %v897_v28 = vpop.f32.mrb[0].mxu0 }
  0xee   : > { %v404_v29 = vadd.f32 %v897_v28, %v823_v27  ;;  %v398_v30 = vpop.f32.mrb[1].mxu0 }
  0xef   : > { %v399_v31 = vadd.f32 %v823_v27, %v398_v30 }
  0xf0   : > { %v478_v32 = vmax.f32 %v404_v29, 0.0 }
  0xf1   : > { %v477_v33 = vmax.f32 %v399_v31, 0.0  ;;  %v900_v34 = vpop.f32.mrb[2].mxu0 }
  0xf2   : > { %v414_v35 = vadd.f32 %v900_v34, %v823_v27  ;;  %v408_v36 = vpop.f32.mrb[3].mxu0 }
  0xf3   : > { %v493_v37 = vpack.c.bf16 %v478_v32, %v477_v33  ;;  %v409_v38 = vadd.f32 %v823_v27, %v408_v36 }
  0xf4   : > { %v480_v39 = vmax.f32 %v414_v35, 0.0 }
  0xf5   : > { %v479_v40 = vmax.f32 %v409_v38, 0.0  ;;  %v903_v41 = vpop.f32.mrb[4].mxu0  ;;  %935 = vmatprep.mubr.bf16.mxu0 %v493_v37 }
  0xf6   : > { %v424_v42 = vadd.f32 %v903_v41, %v823_v27  ;;  %v418_v43 = vpop.f32.mrb[5].mxu0 }
  0xf7   : > { %v494_v44 = vpack.c.bf16 %v480_v39, %v479_v40  ;;  %v419_v45 = vadd.f32 %v823_v27, %v418_v43 }
  0xf8   : > { %v482_v46 = vmax.f32 %v424_v42, 0.0 }
  0xf9   : > { %v481_v47 = vmax.f32 %v419_v45, 0.0  ;;  %v906_v48 = vpop.f32.mrb[6].mxu0  ;;  %936 = vmatmul.mubr.bf16.vlgmr.msra.gmra.mrb[16].mxu0 %v494_v44 }
  0xfa   : > { %v434_v49 = vadd.f32 %v906_v48, %v823_v27  ;;  %v428_v50 = vpop.f32.mrb[7].mxu0 }
  0xfb   : > { %v429_v51 = vadd.f32 %v823_v27, %v428_v50  ;;  %v495_v52 = vpack.c.bf16 %v482_v46, %v481_v47 }
  0xfc   : > { %v484_v53 = vmax.f32 %v434_v49, 0.0 }
  0xfd   : > { %v483_v54 = vmax.f32 %v429_v51, 0.0  ;;  %v909_v55 = vpop.f32.mrb[8].mxu0  ;;  %939 = vmatprep.mubr.bf16.mxu1 %v495_v52 }
  0xfe   : > { %v444_v56 = vadd.f32 %v909_v55, %v823_v27  ;;  %v438_v57 = vpop.f32.mrb[9].mxu0 }
  0xff   : > { %v496_v58 = vpack.c.bf16 %v484_v53, %v483_v54  ;;  %v439_v59 = vadd.f32 %v823_v27, %v438_v57 }
 0x100   : > { %v486_v60 = vmax.f32 %v444_v56, 0.0 }
 0x101   : > { %v485_v61 = vmax.f32 %v439_v59, 0.0  ;;  %v912_v62 = vpop.f32.mrb[10].mxu0  ;;  %940 = vmatmul.mubr.bf16.vlgmr.msra.gmra.mrb[0].mxu1 %v496_v58 }
 0x102   : > { %v454_v63 = vadd.f32 %v912_v62, %v823_v27  ;;  %v448_v0 = vpop.f32.mrb[11].mxu0 }
 0x103   : > { %v497_v1 = vpack.c.bf16 %v486_v60, %v485_v61  ;;  %v449_v2 = vadd.f32 %v823_v27, %v448_v0 }
 0x104   : > { %v488_v3 = vmax.f32 %v454_v63, 0.0 }
 0x105   : > { %v487_v4 = vmax.f32 %v449_v2, 0.0  ;;  %v915_v5 = vpop.f32.mrb[12].mxu0  ;;  %943 = vmatprep.mubr.bf16.mxu1 %v497_v1 }
 0x106   : > { %v464_v6 = vadd.f32 %v915_v5, %v823_v27  ;;  %v458_v7 = vpop.f32.mrb[13].mxu0 }
 0x107   : > { %v498_v8 = vpack.c.bf16 %v488_v3, %v487_v4  ;;  %v459_v9 = vadd.f32 %v823_v27, %v458_v7 }
 0x108   : > { %v490_v10 = vmax.f32 %v464_v6, 0.0 }
 0x109   : > { %v489_v11 = vmax.f32 %v459_v9, 0.0  ;;  %v918_v12 = vpop.f32.mrb[14].mxu0  ;;  %944 = vmatmul.mubr.bf16.gmra.mrb[4].mxu1 %v498_v8 }
 0x10a   : > { %v474_v13 = vadd.f32 %v918_v12, %v823_v27  ;;  %v468_v14 = vpop.f32.mrb[15].mxu0 }
 0x10b   : > { %v499_v15 = vpack.c.bf16 %v490_v10, %v489_v11  ;;  %v469_v16 = vadd.f32 %v823_v27, %v468_v14 }
 0x10c   : > { %v492_v17 = vmax.f32 %v474_v13, 0.0 }
 0x10d   : > { %v491_v18 = vmax.f32 %v469_v16, 0.0  ;;  %947 = vmatprep.mubr.bf16.mxu1 %v499_v15 }
 0x10f   : > { %v500_v19 = vpack.c.bf16 %v492_v17, %v491_v18 }
 0x111   : > { %948 = vmatmul.mubr.bf16.gmra.mrb[8].mxu1 %v500_v19 }
 0x1cc   : > { %v937_v21 = vpop.f32.mrb[16].mxu0 }
 0x1cd   : > { %v671_v23 = vmul.f32 %v937_v21, %v1249_v20  ;;  %v599_v24 = vpop.f32.mrb[17].mxu0 }
 0x1ce   : > { %v669_v25 = vmul.f32 %v1249_v20, %v599_v24  ;;  %v938_v26 = vpop.f32.mrb[18].mxu0 }
 0x1cf   : > { %v694_v27 = vadd.f32 %v1254_v22, %v671_v23  ;;  %v672_v28 = vmul.f32 %v938_v26, %v1249_v20  ;;  %v602_v29 = vpop.f32.mrb[19].mxu0 }
 0x1d0   : > { %v692_v30 = vadd.f32 %v1254_v22, %v669_v25  ;;  %v670_v31 = vmul.f32 %v1249_v20, %v602_v29 }
 0x1d1   : > { %v710_v32 = vmax.f32 %v694_v27, 0.0  ;;  %v695_v33 = vadd.f32 %v1254_v22, %v672_v28 }
 0x1d2   : > { %v708_v34 = vmax.f32 %v692_v30, 0.0  ;;  %v693_v35 = vadd.f32 %v1254_v22, %v670_v31 }
 0x1d3   : > { %726 = vst [vmem:[%s1266_s12 + $0x10] sm:$0xff] %v710_v32  ;;  %v711_v36 = vmax.f32 %v695_v33, 0.0 }
 0x1d4   : > { %724 = vst [vmem:[%s1266_s12] sm:$0xff] %v708_v34  ;;  %v709_v37 = vmax.f32 %v693_v35, 0.0  ;;  %v941_v38 = vpop.f32.mrb[0].mxu1 }
 0x1d5   : > { %727 = vst [vmem:[%s1266_s12 + $0x18] sm:$0xff] %v711_v36  ;;  %v675_v39 = vmul.f32 %v941_v38, %v1249_v20  ;;  %v615_v40 = vpop.f32.mrb[1].mxu1 }
 0x1d6   : > { %725 = vst [vmem:[%s1266_s12 + $0x8] sm:$0xff] %v709_v37  ;;  %v673_v41 = vmul.f32 %v1249_v20, %v615_v40  ;;  %v942_v42 = vpop.f32.mrb[2].mxu1 }
 0x1d7   : > { %v698_v43 = vadd.f32 %v1254_v22, %v675_v39  ;;  %v676_v44 = vmul.f32 %v942_v42, %v1249_v20  ;;  %v618_v45 = vpop.f32.mrb[3].mxu1 }
 0x1d8   : > { %v696_v46 = vadd.f32 %v1254_v22, %v673_v41  ;;  %v674_v47 = vmul.f32 %v1249_v20, %v618_v45 }
 0x1d9   : > { %v714_v48 = vmax.f32 %v698_v43, 0.0  ;;  %v699_v49 = vadd.f32 %v1254_v22, %v676_v44 }
 0x1da   : > { %v712_v50 = vmax.f32 %v696_v46, 0.0  ;;  %v697_v51 = vadd.f32 %v1254_v22, %v674_v47 }
 0x1db   : > { %730 = vst [vmem:[%s1266_s12 + $0x30] sm:$0xff] %v714_v48  ;;  %v715_v52 = vmax.f32 %v699_v49, 0.0 }
 0x1dc   : > { %728 = vst [vmem:[%s1266_s12 + $0x20] sm:$0xff] %v712_v50  ;;  %v713_v53 = vmax.f32 %v697_v51, 0.0  ;;  %v945_v54 = vpop.f32.mrb[4].mxu1 }
 0x1dd   : > { %731 = vst [vmem:[%s1266_s12 + $0x38] sm:$0xff] %v715_v52  ;;  %v679_v55 = vmul.f32 %v945_v54, %v1249_v20  ;;  %v631_v56 = vpop.f32.mrb[5].mxu1 }
 0x1de   : > { %729 = vst [vmem:[%s1266_s12 + $0x28] sm:$0xff] %v713_v53  ;;  %v677_v57 = vmul.f32 %v1249_v20, %v631_v56  ;;  %v946_v58 = vpop.f32.mrb[6].mxu1 }
 0x1df   : > { %v702_v59 = vadd.f32 %v1254_v22, %v679_v55  ;;  %v680_v60 = vmul.f32 %v946_v58, %v1249_v20  ;;  %v634_v61 = vpop.f32.mrb[7].mxu1 }
 0x1e0   : > { %v700_v62 = vadd.f32 %v1254_v22, %v677_v57  ;;  %v678_v63 = vmul.f32 %v1249_v20, %v634_v61 }
 0x1e1   : > { %v718_v0 = vmax.f32 %v702_v59, 0.0  ;;  %v703_v1 = vadd.f32 %v1254_v22, %v680_v60 }
 0x1e2   : > { %v716_v2 = vmax.f32 %v700_v62, 0.0  ;;  %v701_v3 = vadd.f32 %v1254_v22, %v678_v63 }
 0x1e3   : > { %734 = vst [vmem:[%s1266_s12 + $0x50] sm:$0xff] %v718_v0  ;;  %v719_v4 = vmax.f32 %v703_v1, 0.0 }
 0x1e4   : > { %732 = vst [vmem:[%s1266_s12 + $0x40] sm:$0xff] %v716_v2  ;;  %v717_v5 = vmax.f32 %v701_v3, 0.0  ;;  %v949_v6 = vpop.f32.mrb[8].mxu1 }
 0x1e5   : > { %735 = vst [vmem:[%s1266_s12 + $0x58] sm:$0xff] %v719_v4  ;;  %v683_v7 = vmul.f32 %v949_v6, %v1249_v20  ;;  %v647_v8 = vpop.f32.mrb[9].mxu1 }
 0x1e6   : > { %733 = vst [vmem:[%s1266_s12 + $0x48] sm:$0xff] %v717_v5  ;;  %v681_v9 = vmul.f32 %v1249_v20, %v647_v8  ;;  %v950_v10 = vpop.f32.mrb[10].mxu1 }
 0x1e7   : > { %v706_v11 = vadd.f32 %v1254_v22, %v683_v7  ;;  %v684_v12 = vmul.f32 %v950_v10, %v1249_v20  ;;  %v650_v13 = vpop.f32.mrb[11].mxu1 }
 0x1e8   : > { %v704_v14 = vadd.f32 %v1254_v22, %v681_v9  ;;  %v682_v15 = vmul.f32 %v1249_v20, %v650_v13 }
 0x1e9   : > { %v722_v16 = vmax.f32 %v706_v11, 0.0  ;;  %v707_v17 = vadd.f32 %v1254_v22, %v684_v12 }
 0x1ea   : > { %v720_v18 = vmax.f32 %v704_v14, 0.0  ;;  %v705_v19 = vadd.f32 %v1254_v22, %v682_v15 }
 0x1eb   : > { %738 = vst [vmem:[%s1266_s12 + $0x70] sm:$0xff] %v722_v16  ;;  %v723_v21 = vmax.f32 %v707_v17, 0.0 }
 0x1ec   : > { %736 = vst [vmem:[%s1266_s12 + $0x60] sm:$0xff] %v720_v18  ;;  %v721_v20 = vmax.f32 %v705_v19, 0.0 }
 0x1ed   : > { %739 = vst [vmem:[%s1266_s12 + $0x78] sm:$0xff] %v723_v21 }
 0x1ee   : > { %737 = vst [vmem:[%s1266_s12 + $0x68] sm:$0xff] %v721_v20 }
 0x1ef   : > { %1036 = shalt.err (!%p1033_p3)
}
 0x1f0   : > { %s1037_s26 = scalar_lea.hbm %s1310_s17, 2048  ;;  %s1041_s10 = scalar_lea.hbm %s1366_s6, 4096 }
 0x1f1   : > { %p1038_p4 = scmp.ne.s32.totalorder %s1310_s17, %s1037_s26  ;;  %p1042_p9 = scmp.lt.u32.totalorder %s1310_s17, %s1366_s6 }
 0x1f2   : > { %p1043_p10 = scmp.lt.u32.totalorder %s1041_s10, %s1037_s26  ;;  %p1045_p12 = scmp.lt.u32.totalorder %s1037_s26, %s1310_s17 }
 0x1f3   : > { %p1039_p7 = pnand %p1038_p4, %p1164_p5 }
 0x1f4   : > { %p1044_p11 = por %p1043_p10, %p1042_p9 }
 0x1f5   : > { %p1040_p8 = pneg %p1039_p7 }
 0x1f6   : > { %p1046_p13 = por %p1045_p12, %p1044_p11 }
 0x1f8   : > { %p1047_p0 = pnand %p1046_p13, %p1040_p8 }
 0x1fa   : > { %1050 = shalt.err (!%p1047_p0)
}
 0x1fb   : > { %s1089_s13 = smov 128   ;;  %s1090_s15 = smov 8  }
 0x1fc   : > { %973 = dma.vmem_to_hbm [thread:$0]  (%p1164_p5), %s1312_s14, 2048, %s1310_s17, %s1319_s25, %s1089_s13, %s1089_s13, %s1090_s15  }
 0x1fd PF: > { %p979_p1 = scmp.ge.s32.totalorder %s1085_s24, 2  ;;  %s769_s16 = sand.u32 1, %s1073_s21  }
 0x1fe   : > { %s770_s18 = scalar_lea.sflag [#allocation3], %s769_s16 }
 0x1ff   : > { %p976_p2 = pnand %p979_p1, %p1168_p6 }
 0x201   : > { %1068 = dma.done.wait (!%p976_p2), %s770_s18, 2048  }
 0x202   : > { %1070 = vsyncadd (!%p976_p2), %s770_s18, 4294965248  ;;  %p16_p3 = scmp.ge.s32.totalorder %s1151_s27, 4   ;;  %s1369_s21 = smov %s1077_s22 }
 0x203   : > { %s1370_s22 = smov %s1081_s23  ;;  %s1371_s23 = smov %s1162_s30 }
 0x204   : > { %s1372_s24 = smov %s1151_s27  ;;  %18 = sbr.rel (!%p16_p3) target bundleno = 3 (0x3), region = 79 }
 0x20b   :  { %775 = vsyncpa [#allocation3], 1 }
 0x20c   :  { %777 = vsyncpa [#allocation3 + $0x1], 1 }

// kernel: pos_embedding.4
= control target key start
LH: loop header
LB: loop body
LE: loop exit
PB: predicated region body
PF: predicated region fallthrough
CT: control target
= control target key end

     0   :  { %s932_s18 = smov 0   ;;  %s1031_s0 = inlined_call_operand.vmem [shape: f32[256,10], index: 0, kind: input, shape index: {}]   ;;  %s1032_s1 = inlined_call_operand.vmem [shape: f32[10,128], index: 1, kind: input, shape index: {}]   ;;  %s1033_s2 = inlined_call_operand.vmem [shape: f32[1,128], index: 2, kind: input, shape index: {}]   ;;  %s1034_s3 = inlined_call_operand.vmem [shape: bf16[128,128], index: 3, kind: input, shape index: {}]   ;;  %s1035_s4 = inlined_call_operand.vmem [shape: f32[1,128], index: 4, kind: output, shape index: {0}]   ;;  %s1036_s5 = inlined_call_operand.vmem [shape: f32[1,128], index: 5, kind: output, shape index: {1}]  }
   0x1 LB: > { %s723_s19 = sadd.s32 4294967295, %s898_s18   ;;  %p726_p0 = scmp.ge.s32.totalorder %s898_s18, 1  ;;  %s898_s18 = sphi %s932_s18, %s16_s18  }
   0x2   : > { %p181_p1 = scmp.lt.s32.totalorder %s898_s18, 3 }
   0x4   : > { %p182_p2 = pnand %p726_p0, %p181_p1 }
   0x5   : > { %s727_s20 = sshll.u32 (!%p182_p2), %s723_s19, 4  ;;  %p729_p4 = scmp.ne.s32.totalorder (!%p182_p2), %s723_s19, 0 }
   0x6   : > { %185 = sbr.rel (%p182_p2) target bundleno = 512 (0x200), region = 36  ;;  %p205_p3 = scmp.lt.s32.totalorder (!%p182_p2), %s727_s20, 31 }
   0xd   : > { %s1038_s20 = smov (!%p205_p3, %s727_s20), 31  ;;  %214 = sbr.rel (%p729_p4) target bundleno = 20 (0x14), region = 40 }
   0xe   : > { %s728_s21 = sshll.u32 %s1038_s20, 3  ;;  %v900_v0 = vmov (!%p729_p4), 0.0  }
   0xf   : > { %s943_s24 = scalar_lea.vmem %s1031_s0, %s728_s21  ;;  %215 = vst [vmem:[%s1035_s4] sm:$0x1] (!%p729_p4), %v900_v0  ;;  %216 = vst [vmem:[%s1036_s5] sm:$0x1] (!%p729_p4), %v900_v0 }
  0x14 PF: > { %v233_v1 = vld [vmem:[%s1032_s1] sm:$0xff]  ;;  %v234_v2 = vld [vmem:[%s1032_s1 + $0x8] sm:$0x3]  ;;  %vm291_vm0 = vcmask 1041408   ;;  %vm901_vm1 = vmmov 1   ;;  %vm242_vm3 = vcmask 80896  }
  0x15   : > { %v217_v3 = vld [vmem:[%s943_s24] sm:$0xff]  ;;  %v852_v4 = vpack.c.bf16 %v234_v2, %v233_v1  ;;  %vm853_vm2 = vmpackc.low %vm291_vm0, %vm901_vm1  ;;  %v218_v5 = vld [vmem:[%s943_s24 + $0x8] sm:$0xff] }
  0x16   : > { %796 = vmatprep.mubr.msk.f32.mxu0 %vm242_vm3, %v217_v3  ;;  %v219_v6 = vld [vmem:[%s943_s24 + $0x10] sm:$0xff]  ;;  %v220_v7 = vld [vmem:[%s943_s24 + $0x18] sm:$0xff]  ;;  %v884_v8 = vld [vmem:[%s1034_s3] sm:$0xff]  }
  0x17   : > { %854 = vmatprep.subr.msk.bf16.mxu0 %vm853_vm2, %v852_v4  ;;  %v885_v9 = vld [vmem:[%s1034_s3 + $0x8] sm:$0xff]   ;;  %v221_v10 = vld [vmem:[%s943_s24 + $0x20] sm:$0xff]  ;;  %858 = vmatprep.subr.bf16.mxu1 %v884_v8  ;;  %v886_v11 = vld [vmem:[%s1034_s3 + $0x10] sm:$0xff]  }
  0x18   : > { %857 = vmatpush3.bf16.msk.msra.mxu0 %vm853_vm2, %v852_v4  ;;  %866 = vmatpush3.bf16.msra.mxu1 %v884_v8  ;;  %v222_v12 = vld [vmem:[%s943_s24 + $0x28] sm:$0xff]  ;;  %v223_v13 = vld [vmem:[%s943_s24 + $0x30] sm:$0xff]  ;;  %v887_v14 = vld [vmem:[%s1034_s3 + $0x18] sm:$0xff]  }
  0x19   : > { %820 = vmatprep.subr.bf16.mxu0 %v884_v8  ;;  %859 = vmatprep.subr.bf16.mxu1 %v885_v9  ;;  %v224_v15 = vld [vmem:[%s943_s24 + $0x38] sm:$0xff]  ;;  %v225_v16 = vld [vmem:[%s943_s24 + $0x40] sm:$0xff]  ;;  %v226_v18 = vld [vmem:[%s943_s24 + $0x48] sm:$0xff] }
  0x1a   : > { %v888_v17 = vld [vmem:[%s1034_s3 + $0x20] sm:$0xff]   ;;  %v227_v19 = vld [vmem:[%s943_s24 + $0x50] sm:$0xff]  ;;  %v889_v20 = vld [vmem:[%s1034_s3 + $0x28] sm:$0xff]  }
  0x1b   : > { %797 = vmatmul.mubr.msk.f32.vlgmr.msra.gmra.mrb[0].mxu0 %vm242_vm3, %v218_v5  ;;  %v228_v21 = vld [vmem:[%s943_s24 + $0x58] sm:$0xff]  ;;  %v229_v22 = vld [vmem:[%s943_s24 + $0x60] sm:$0xff]  ;;  %v230_v23 = vld [vmem:[%s943_s24 + $0x68] sm:$0xff] }
  0x1c   : > { %799 = vmatprep.mubr.msk.f32.mxu0 %vm242_vm3, %v219_v6  ;;  %821 = vmatpush3.bf16.msra.mxu0 %v884_v8  ;;  %v231_v24 = vld [vmem:[%s943_s24 + $0x70] sm:$0xff]  ;;  %v232_v25 = vld [vmem:[%s943_s24 + $0x78] sm:$0xff]  ;;  %v730_v28 = vld [vmem:[%s1033_s2] ss:$0 sm:$0xff] }
  0x1d   : > { %822 = vmatprep.subr.bf16.mxu0 %v885_v9  ;;  %867 = vmatpush3.bf16.msra.mxu1 %v885_v9  ;;  %v890_v26 = vld [vmem:[%s1034_s3 + $0x30] sm:$0xff]   ;;  %v891_v27 = vld [vmem:[%s1034_s3 + $0x38] sm:$0xff]  }
  0x1e   : > { %860 = vmatprep.subr.bf16.mxu1 %v886_v11 }
  0x1f   : > { %800 = vmatmul.mubr.msk.f32.gmra.mrb[2].mxu0 %vm242_vm3, %v220_v7 }
  0x20   : > { %802 = vmatprep.mubr.msk.f32.mxu0 %vm242_vm3, %v221_v10  ;;  %823 = vmatpush3.bf16.msra.mxu0 %v885_v9 }
  0x21   : > { %824 = vmatprep.subr.bf16.mxu0 %v886_v11  ;;  %868 = vmatpush3.bf16.msra.mxu1 %v886_v11 }
  0x22   : > { %861 = vmatprep.subr.bf16.mxu1 %v887_v14 }
  0x23   : > { %803 = vmatmul.mubr.msk.f32.gmra.mrb[4].mxu0 %vm242_vm3, %v222_v12 }
  0x24   : > { %805 = vmatprep.mubr.msk.f32.mxu0 %vm242_vm3, %v223_v13  ;;  %825 = vmatpush3.bf16.msra.mxu0 %v886_v11 }
  0x25   : > { %826 = vmatprep.subr.bf16.mxu0 %v887_v14  ;;  %869 = vmatpush3.bf16.msra.mxu1 %v887_v14 }
  0x26   : > { %862 = vmatprep.subr.bf16.mxu1 %v888_v17 }
  0x27   : > { %806 = vmatmul.mubr.msk.f32.gmra.mrb[6].mxu0 %vm242_vm3, %v224_v15 }
  0x28   : > { %808 = vmatprep.mubr.msk.f32.mxu0 %vm242_vm3, %v225_v16  ;;  %827 = vmatpush3.bf16.msra.mxu0 %v887_v14 }
  0x29   : > { %828 = vmatprep.subr.bf16.mxu0 %v888_v17  ;;  %870 = vmatpush3.bf16.msra.mxu1 %v888_v17 }
  0x2a   : > { %863 = vmatprep.subr.bf16.mxu1 %v889_v20 }
  0x2b   : > { %809 = vmatmul.mubr.msk.f32.gmra.mrb[8].mxu0 %vm242_vm3, %v226_v18 }
  0x2c   : > { %811 = vmatprep.mubr.msk.f32.mxu0 %vm242_vm3, %v227_v19  ;;  %829 = vmatpush3.bf16.msra.mxu0 %v888_v17 }
  0x2d   : > { %830 = vmatprep.subr.bf16.mxu0 %v889_v20  ;;  %871 = vmatpush3.bf16.msra.mxu1 %v889_v20 }
  0x2e   : > { %864 = vmatprep.subr.bf16.mxu1 %v890_v26 }
  0x2f   : > { %812 = vmatmul.mubr.msk.f32.gmra.mrb[10].mxu0 %vm242_vm3, %v228_v21 }
  0x30   : > { %814 = vmatprep.mubr.msk.f32.mxu0 %vm242_vm3, %v229_v22  ;;  %831 = vmatpush3.bf16.msra.mxu0 %v889_v20 }
  0x31   : > { %832 = vmatprep.subr.bf16.mxu0 %v890_v26  ;;  %872 = vmatpush3.bf16.msra.mxu1 %v890_v26 }
  0x32   : > { %865 = vmatprep.subr.bf16.mxu1 %v891_v27 }
  0x33   : > { %815 = vmatmul.mubr.msk.f32.gmra.mrb[12].mxu0 %vm242_vm3, %v230_v23 }
  0x34   : > { %817 = vmatprep.mubr.msk.f32.mxu0 %vm242_vm3, %v231_v24  ;;  %833 = vmatpush3.bf16.msra.mxu0 %v890_v26 }
  0x35   : > { %834 = vmatprep.subr.bf16.mxu0 %v891_v27  ;;  %873 = vmatpush3.bf16.msra.mxu1 %v891_v27 }
  0x37   : > { %818 = vmatmul.mubr.msk.f32.gmra.mrb[14].mxu0 %vm242_vm3, %v232_v25 }
  0x38   : > { %835 = vmatpush3.bf16.msra.mxu0 %v891_v27 }
  0xee   : > { %v798_v29 = vpop.f32.mrb[0].mxu0 }
  0xef   : > { %v367_v30 = vadd.f32 %v798_v29, %v730_v28  ;;  %v361_v31 = vpop.f32.mrb[1].mxu0 }
  0xf0   : > { %v362_v32 = vadd.f32 %v730_v28, %v361_v31 }
  0xf1   : > { %v441_v33 = vmax.f32 %v367_v30, 0.0 }
  0xf2   : > { %v440_v34 = vmax.f32 %v362_v32, 0.0  ;;  %v801_v35 = vpop.f32.mrb[2].mxu0 }
  0xf3   : > { %v377_v36 = vadd.f32 %v801_v35, %v730_v28  ;;  %v371_v37 = vpop.f32.mrb[3].mxu0 }
  0xf4   : > { %v456_v38 = vpack.c.bf16 %v441_v33, %v440_v34  ;;  %v372_v39 = vadd.f32 %v730_v28, %v371_v37 }
  0xf5   : > { %v443_v40 = vmax.f32 %v377_v36, 0.0 }
  0xf6   : > { %v442_v41 = vmax.f32 %v372_v39, 0.0  ;;  %v804_v42 = vpop.f32.mrb[4].mxu0  ;;  %836 = vmatprep.mubr.bf16.mxu0 %v456_v38 }
  0xf7   : > { %v387_v43 = vadd.f32 %v804_v42, %v730_v28  ;;  %v381_v44 = vpop.f32.mrb[5].mxu0 }
  0xf8   : > { %v457_v45 = vpack.c.bf16 %v443_v40, %v442_v41  ;;  %v382_v46 = vadd.f32 %v730_v28, %v381_v44 }
  0xf9   : > { %v445_v47 = vmax.f32 %v387_v43, 0.0 }
  0xfa   : > { %v444_v48 = vmax.f32 %v382_v46, 0.0  ;;  %v807_v49 = vpop.f32.mrb[6].mxu0  ;;  %837 = vmatmul.mubr.bf16.vlgmr.msra.gmra.mrb[16].mxu0 %v457_v45 }
  0xfb   : > { %v397_v50 = vadd.f32 %v807_v49, %v730_v28  ;;  %v391_v51 = vpop.f32.mrb[7].mxu0 }
  0xfc   : > { %v392_v52 = vadd.f32 %v730_v28, %v391_v51  ;;  %v458_v53 = vpack.c.bf16 %v445_v47, %v444_v48 }
  0xfd   : > { %v447_v54 = vmax.f32 %v397_v50, 0.0 }
  0xfe   : > { %v446_v55 = vmax.f32 %v392_v52, 0.0  ;;  %v810_v56 = vpop.f32.mrb[8].mxu0  ;;  %840 = vmatprep.mubr.bf16.mxu1 %v458_v53 }
  0xff   : > { %v407_v57 = vadd.f32 %v810_v56, %v730_v28  ;;  %v401_v58 = vpop.f32.mrb[9].mxu0 }
 0x100   : > { %v459_v59 = vpack.c.bf16 %v447_v54, %v446_v55  ;;  %v402_v60 = vadd.f32 %v730_v28, %v401_v58 }
 0x101   : > { %v449_v61 = vmax.f32 %v407_v57, 0.0 }
 0x102   : > { %v448_v62 = vmax.f32 %v402_v60, 0.0  ;;  %v813_v63 = vpop.f32.mrb[10].mxu0  ;;  %841 = vmatmul.mubr.bf16.vlgmr.msra.gmra.mrb[0].mxu1 %v459_v59 }
 0x103   : > { %v417_v0 = vadd.f32 %v813_v63, %v730_v28  ;;  %v411_v1 = vpop.f32.mrb[11].mxu0 }
 0x104   : > { %v460_v2 = vpack.c.bf16 %v449_v61, %v448_v62  ;;  %v412_v3 = vadd.f32 %v730_v28, %v411_v1 }
 0x105   : > { %v451_v4 = vmax.f32 %v417_v0, 0.0 }
 0x106   : > { %v450_v5 = vmax.f32 %v412_v3, 0.0  ;;  %v816_v6 = vpop.f32.mrb[12].mxu0  ;;  %844 = vmatprep.mubr.bf16.mxu1 %v460_v2 }
 0x107   : > { %v427_v7 = vadd.f32 %v816_v6, %v730_v28  ;;  %v421_v8 = vpop.f32.mrb[13].mxu0 }
 0x108   : > { %v461_v9 = vpack.c.bf16 %v451_v4, %v450_v5  ;;  %v422_v10 = vadd.f32 %v730_v28, %v421_v8 }
 0x109   : > { %v453_v11 = vmax.f32 %v427_v7, 0.0 }
 0x10a   : > { %v452_v12 = vmax.f32 %v422_v10, 0.0  ;;  %v819_v13 = vpop.f32.mrb[14].mxu0  ;;  %845 = vmatmul.mubr.bf16.gmra.mrb[4].mxu1 %v461_v9 }
 0x10b   : > { %v437_v14 = vadd.f32 %v819_v13, %v730_v28  ;;  %v431_v15 = vpop.f32.mrb[15].mxu0 }
 0x10c   : > { %v462_v16 = vpack.c.bf16 %v453_v11, %v452_v12  ;;  %v432_v17 = vadd.f32 %v730_v28, %v431_v15 }
 0x10d   : > { %v455_v18 = vmax.f32 %v437_v14, 0.0 }
 0x10e   : > { %v454_v19 = vmax.f32 %v432_v17, 0.0  ;;  %848 = vmatprep.mubr.bf16.mxu1 %v462_v16 }
 0x110   : > { %v463_v20 = vpack.c.bf16 %v455_v18, %v454_v19 }
 0x112   : > { %849 = vmatmul.mubr.bf16.gmra.mrb[8].mxu1 %v463_v20 }
 0x1cd   : > { %v838_v21 = vpop.f32.mrb[16].mxu0 }
 0x1ce   : > { %v562_v22 = vpop.f32.mrb[17].mxu0  ;;  %v652_v29 = vmul.f32 %v838_v21, %v838_v21 }
 0x1cf   : > { %v839_v23 = vpop.f32.mrb[18].mxu0  ;;  %v650_v25 = vmul.f32 %v562_v22, %v562_v22 }
 0x1d0   : > { %v565_v24 = vpop.f32.mrb[19].mxu0  ;;  %v653_v32 = vmul.f32 %v839_v23, %v839_v23 }
 0x1d1   : > { %v626_v26 = vadd.f32 %v565_v24, %v562_v22  ;;  %v651_v27 = vmul.f32 %v565_v24, %v565_v24 }
 0x1d3   : > { %v627_v30 = vadd.f32 %v838_v21, %v626_v26  ;;  %v666_v31 = vadd.f32 %v651_v27, %v650_v25 }
 0x1d5   : > { %v667_v33 = vadd.f32 %v666_v31, %v652_v29  ;;  %v842_v34 = vpop.f32.mrb[0].mxu1  ;;  %v628_v35 = vadd.f32 %v839_v23, %v627_v30  ;;  %v625_v29 = vld [vmem:[%s1035_s4] sm:$0x1] }
 0x1d6   : > { %v578_v28 = vpop.f32.mrb[1].mxu1  ;;  %v656_v44 = vmul.f32 %v842_v34, %v842_v34 }
 0x1d7   : > { %v629_v36 = vadd.f32 %v628_v35, %v578_v28  ;;  %v654_v37 = vmul.f32 %v578_v28, %v578_v28  ;;  %v668_v38 = vadd.f32 %v667_v33, %v653_v32  ;;  %v843_v39 = vpop.f32.mrb[2].mxu1  ;;  %v649_v32 = vld [vmem:[%s1036_s5] sm:$0x1] }
 0x1d8   : > { %v581_v40 = vpop.f32.mrb[3].mxu1  ;;  %v657_v47 = vmul.f32 %v843_v39, %v843_v39 }
 0x1d9   : > { %v669_v41 = vadd.f32 %v668_v38, %v654_v37  ;;  %v630_v42 = vadd.f32 %v629_v36, %v581_v40  ;;  %v655_v43 = vmul.f32 %v581_v40, %v581_v40 }
 0x1db   : > { %v631_v45 = vadd.f32 %v842_v34, %v630_v42  ;;  %v670_v46 = vadd.f32 %v669_v41, %v655_v43 }
 0x1dd   : > { %v671_v48 = vadd.f32 %v670_v46, %v656_v44  ;;  %v846_v49 = vpop.f32.mrb[4].mxu1  ;;  %v632_v50 = vadd.f32 %v843_v39, %v631_v45 }
 0x1de   : > { %v594_v51 = vpop.f32.mrb[5].mxu1  ;;  %v660_v60 = vmul.f32 %v846_v49, %v846_v49 }
 0x1df   : > { %v633_v52 = vadd.f32 %v632_v50, %v594_v51  ;;  %v658_v53 = vmul.f32 %v594_v51, %v594_v51  ;;  %v672_v54 = vadd.f32 %v671_v48, %v657_v47  ;;  %v847_v55 = vpop.f32.mrb[6].mxu1 }
 0x1e0   : > { %v597_v56 = vpop.f32.mrb[7].mxu1  ;;  %v661_v63 = vmul.f32 %v847_v55, %v847_v55 }
 0x1e1   : > { %v673_v57 = vadd.f32 %v672_v54, %v658_v53  ;;  %v634_v58 = vadd.f32 %v633_v52, %v597_v56  ;;  %v659_v59 = vmul.f32 %v597_v56, %v597_v56 }
 0x1e3   : > { %v635_v61 = vadd.f32 %v846_v49, %v634_v58  ;;  %v674_v62 = vadd.f32 %v673_v57, %v659_v59 }
 0x1e5   : > { %v675_v0 = vadd.f32 %v674_v62, %v660_v60  ;;  %v850_v1 = vpop.f32.mrb[8].mxu1  ;;  %v636_v2 = vadd.f32 %v847_v55, %v635_v61 }
 0x1e6   : > { %v610_v3 = vpop.f32.mrb[9].mxu1  ;;  %v664_v12 = vmul.f32 %v850_v1, %v850_v1 }
 0x1e7   : > { %v637_v4 = vadd.f32 %v636_v2, %v610_v3  ;;  %v662_v5 = vmul.f32 %v610_v3, %v610_v3  ;;  %v676_v6 = vadd.f32 %v675_v0, %v661_v63  ;;  %v851_v7 = vpop.f32.mrb[10].mxu1 }
 0x1e8   : > { %v613_v8 = vpop.f32.mrb[11].mxu1  ;;  %v665_v15 = vmul.f32 %v851_v7, %v851_v7 }
 0x1e9   : > { %v677_v9 = vadd.f32 %v676_v6, %v662_v5  ;;  %v638_v10 = vadd.f32 %v637_v4, %v613_v8  ;;  %v663_v11 = vmul.f32 %v613_v8, %v613_v8 }
 0x1eb   : > { %v639_v13 = vadd.f32 %v850_v1, %v638_v10  ;;  %v678_v14 = vadd.f32 %v677_v9, %v663_v11 }
 0x1ed   : > { %v640_v16 = vadd.f32 %v851_v7, %v639_v13  ;;  %v679_v17 = vadd.f32 %v678_v14, %v664_v12 }
 0x1ef   : > { %v641_v18 = vrot.slane %v640_v16, 4  ;;  %v680_v19 = vadd.f32 %v679_v17, %v665_v15 }
 0x1f1   : > { %v642_v20 = vadd.f32 %v641_v18, %v640_v16  ;;  %v681_v21 = vrot.slane %v680_v19, 4 }
 0x1f3   : > { %v643_v22 = vrot.slane %v642_v20, 2  ;;  %v682_v23 = vadd.f32 %v681_v21, %v680_v19 }
 0x1f5   : > { %v644_v24 = vadd.f32 %v643_v22, %v642_v20  ;;  %v683_v25 = vrot.slane %v682_v23, 2 }
 0x1f7   : > { %v645_v26 = vrot.slane %v644_v24, 1  ;;  %v684_v27 = vadd.f32 %v683_v25, %v682_v23 }
 0x1f9   : > { %v646_v30 = vadd.f32 %v645_v26, %v644_v24  ;;  %v685_v31 = vrot.slane %v684_v27, 1 }
 0x1fb   : > { %v647_v33 = vadd.f32 %v646_v30, %v625_v29  ;;  %v686_v34 = vadd.f32 %v685_v31, %v684_v27 }
 0x1fd   : > { %648 = vst [vmem:[%s1035_s4] sm:$0x1] %v647_v33  ;;  %v687_v35 = vadd.f32 %v686_v34, %v649_v32 }
 0x1ff   : > { %688 = vst [vmem:[%s1036_s5] sm:$0x1] %v687_v35 }
 0x200 PF: > { %s16_s18 = sadd.s32 1, %s898_s18  }
 0x201   : > { %p13_p5 = scmp.ge.s32.totalorder %s16_s18, 4  }
 0x203   :  { %15 = sbr.rel (!%p13_p5) target bundleno = 1 (0x1), region = 74 }

// kernel: pos_embedding.3
= control target key start
LH: loop header
LB: loop body
LE: loop exit
PB: predicated region body
PF: predicated region fallthrough
CT: control target
= control target key end

     0   :  { %s596_s12 = smov 0   ;;  %s668_s0 = inlined_call_operand.vmem [shape: f32[256,10], index: 0, kind: input, shape index: {}]   ;;  %s669_s1 = inlined_call_operand.vmem [shape: f32[10,128], index: 1, kind: input, shape index: {}]   ;;  %s670_s2 = inlined_call_operand.vmem [shape: f32[1,128], index: 2, kind: output, shape index: {0}]   ;;  %s671_s3 = inlined_call_operand.vmem [shape: f32[1,128], index: 3, kind: output, shape index: {1}]  }
   0x1 LB: > { %s476_s13 = sadd.s32 4294967295, %s572_s12   ;;  %p479_p0 = scmp.ge.s32.totalorder %s572_s12, 1  ;;  %s572_s12 = sphi %s596_s12, %s14_s12  }
   0x2   : > { %p131_p1 = scmp.lt.s32.totalorder %s572_s12, 3 }
   0x4   : > { %p132_p2 = pnand %p479_p0, %p131_p1 }
   0x5   : > { %s480_s14 = sshll.u32 (!%p132_p2), %s476_s13, 4  ;;  %p482_p4 = scmp.ne.s32.totalorder (!%p132_p2), %s476_s13, 0 }
   0x6   : > { %135 = sbr.rel (%p132_p2) target bundleno = 289 (0x121), region = 28  ;;  %p151_p3 = scmp.lt.s32.totalorder (!%p132_p2), %s480_s14, 31 }
   0xd   : > { %s673_s14 = smov (!%p151_p3, %s480_s14), 31  ;;  %159 = sbr.rel (%p482_p4) target bundleno = 20 (0x14), region = 32 }
   0xe   : > { %s481_s15 = sshll.u32 %s673_s14, 3  ;;  %v574_v0 = vmov (!%p482_p4), 0.0  }
   0xf   : > { %s607_s18 = scalar_lea.vmem %s668_s0, %s481_s15  ;;  %160 = vst [vmem:[%s670_s2] sm:$0x1] (!%p482_p4), %v574_v0  ;;  %161 = vst [vmem:[%s671_s3] sm:$0x1] (!%p482_p4), %v574_v0 }
  0x14 PF: > { %v178_v1 = vld [vmem:[%s669_s1] sm:$0xff]  ;;  %v179_v2 = vld [vmem:[%s669_s1 + $0x8] sm:$0x3]  ;;  %vm229_vm0 = vcmask 1041408   ;;  %vm575_vm1 = vmmov 1   ;;  %vm180_vm3 = vcmask 80896  }
  0x15   : > { %v162_v3 = vld [vmem:[%s607_s18] sm:$0xff]  ;;  %v548_v4 = vpack.c.bf16 %v179_v2, %v178_v1  ;;  %vm549_vm2 = vmpackc.low %vm229_vm0, %vm575_vm1  ;;  %v163_v6 = vld [vmem:[%s607_s18 + $0x8] sm:$0xff] }
  0x16   : > { %524 = vmatprep.mubr.msk.f32.mxu0 %vm180_vm3, %v162_v3  ;;  %v170_v5 = vld [vmem:[%s607_s18 + $0x40] sm:$0xff]  ;;  %v171_v7 = vld [vmem:[%s607_s18 + $0x48] sm:$0xff]  ;;  %v164_v8 = vld [vmem:[%s607_s18 + $0x10] sm:$0xff] }
  0x17   : > { %550 = vmatprep.subr.msk.bf16.mxu0 %vm549_vm2, %v548_v4  ;;  %554 = vmatprep.subr.msk.bf16.mxu1 %vm549_vm2, %v548_v4  ;;  %v172_v9 = vld [vmem:[%s607_s18 + $0x50] sm:$0xff]  ;;  %v165_v10 = vld [vmem:[%s607_s18 + $0x18] sm:$0xff]  ;;  %v166_v12 = vld [vmem:[%s607_s18 + $0x20] sm:$0xff] }
  0x18   : > { %553 = vmatpush3.bf16.msk.msra.mxu0 %vm549_vm2, %v548_v4  ;;  %555 = vmatpush3.bf16.msk.msra.mxu1 %vm549_vm2, %v548_v4  ;;  %v173_v11 = vld [vmem:[%s607_s18 + $0x58] sm:$0xff]  ;;  %v174_v13 = vld [vmem:[%s607_s18 + $0x60] sm:$0xff]  ;;  %v167_v14 = vld [vmem:[%s607_s18 + $0x28] sm:$0xff] }
  0x19   : > { %536 = vmatprep.mubr.msk.f32.mxu1 %vm180_vm3, %v170_v5  ;;  %v175_v15 = vld [vmem:[%s607_s18 + $0x68] sm:$0xff]  ;;  %v168_v16 = vld [vmem:[%s607_s18 + $0x30] sm:$0xff]  ;;  %v169_v18 = vld [vmem:[%s607_s18 + $0x38] sm:$0xff] }
  0x1a   : > { %v176_v17 = vld [vmem:[%s607_s18 + $0x70] sm:$0xff]  ;;  %v177_v19 = vld [vmem:[%s607_s18 + $0x78] sm:$0xff] }
  0x1b   : > { %525 = vmatmul.mubr.msk.f32.vlgmr.msra.gmra.mrb[0].mxu0 %vm180_vm3, %v163_v6  ;;  %537 = vmatmul.mubr.msk.f32.vlgmr.msra.gmra.mrb[0].mxu1 %vm180_vm3, %v171_v7 }
  0x1c   : > { %527 = vmatprep.mubr.msk.f32.mxu0 %vm180_vm3, %v164_v8  ;;  %539 = vmatprep.mubr.msk.f32.mxu1 %vm180_vm3, %v172_v9 }
  0x1f   : > { %528 = vmatmul.mubr.msk.f32.gmra.mrb[2].mxu0 %vm180_vm3, %v165_v10  ;;  %540 = vmatmul.mubr.msk.f32.gmra.mrb[2].mxu1 %vm180_vm3, %v173_v11 }
  0x20   : > { %530 = vmatprep.mubr.msk.f32.mxu0 %vm180_vm3, %v166_v12  ;;  %542 = vmatprep.mubr.msk.f32.mxu1 %vm180_vm3, %v174_v13 }
  0x23   : > { %531 = vmatmul.mubr.msk.f32.gmra.mrb[4].mxu0 %vm180_vm3, %v167_v14  ;;  %543 = vmatmul.mubr.msk.f32.gmra.mrb[4].mxu1 %vm180_vm3, %v175_v15 }
  0x24   : > { %533 = vmatprep.mubr.msk.f32.mxu0 %vm180_vm3, %v168_v16  ;;  %545 = vmatprep.mubr.msk.f32.mxu1 %vm180_vm3, %v176_v17 }
  0x27   : > { %534 = vmatmul.mubr.msk.f32.gmra.mrb[6].mxu0 %vm180_vm3, %v169_v18  ;;  %546 = vmatmul.mubr.msk.f32.gmra.mrb[6].mxu1 %vm180_vm3, %v177_v19 }
  0xee   : > { %v526_v20 = vpop.f32.mrb[0].mxu0  ;;  %v538_v21 = vpop.f32.mrb[0].mxu1 }
  0xef   : > { %v404_v22 = vmul.f32 %v526_v20, %v526_v20  ;;  %v299_v23 = vpop.f32.mrb[1].mxu0  ;;  %v339_v24 = vpop.f32.mrb[1].mxu1  ;;  %v412_v60 = vmul.f32 %v538_v21, %v538_v21 }
  0xf0   : > { %v379_v25 = vadd.f32 %v526_v20, %v299_v23  ;;  %v403_v26 = vmul.f32 %v299_v23, %v299_v23  ;;  %v411_v57 = vmul.f32 %v339_v24, %v339_v24 }
  0xf2   : > { %v419_v27 = vadd.f32 %v404_v22, %v403_v26  ;;  %v529_v28 = vpop.f32.mrb[2].mxu0  ;;  %v541_v29 = vpop.f32.mrb[2].mxu1 }
  0xf3   : > { %v309_v30 = vpop.f32.mrb[3].mxu0  ;;  %v349_v31 = vpop.f32.mrb[3].mxu1  ;;  %v406_v34 = vmul.f32 %v529_v28, %v529_v28  ;;  %v414_v2 = vmul.f32 %v541_v29, %v541_v29 }
  0xf4   : > { %v380_v32 = vadd.f32 %v379_v25, %v309_v30  ;;  %v405_v33 = vmul.f32 %v309_v30, %v309_v30  ;;  %v413_v63 = vmul.f32 %v349_v31, %v349_v31  ;;  %v402_v30 = vld [vmem:[%s671_s3] sm:$0x1] }
  0xf6   : > { %v420_v35 = vadd.f32 %v419_v27, %v405_v33  ;;  %v532_v36 = vpop.f32.mrb[4].mxu0  ;;  %v381_v37 = vadd.f32 %v529_v28, %v380_v32  ;;  %v544_v38 = vpop.f32.mrb[4].mxu1  ;;  %v378_v27 = vld [vmem:[%s670_s2] sm:$0x1] }
  0xf7   : > { %v319_v39 = vpop.f32.mrb[5].mxu0  ;;  %v359_v40 = vpop.f32.mrb[5].mxu1  ;;  %v408_v44 = vmul.f32 %v532_v36, %v532_v36  ;;  %v416_v8 = vmul.f32 %v544_v38, %v544_v38 }
  0xf8   : > { %v382_v41 = vadd.f32 %v381_v37, %v319_v39  ;;  %v407_v42 = vmul.f32 %v319_v39, %v319_v39  ;;  %v421_v43 = vadd.f32 %v420_v35, %v406_v34  ;;  %v415_v5 = vmul.f32 %v359_v40, %v359_v40 }
  0xfa   : > { %v422_v45 = vadd.f32 %v421_v43, %v407_v42  ;;  %v535_v46 = vpop.f32.mrb[6].mxu0  ;;  %v383_v47 = vadd.f32 %v532_v36, %v382_v41  ;;  %v547_v48 = vpop.f32.mrb[6].mxu1 }
  0xfb   : > { %v329_v49 = vpop.f32.mrb[7].mxu0  ;;  %v369_v50 = vpop.f32.mrb[7].mxu1  ;;  %v410_v54 = vmul.f32 %v535_v46, %v535_v46  ;;  %v418_v14 = vmul.f32 %v547_v48, %v547_v48 }
  0xfc   : > { %v384_v51 = vadd.f32 %v383_v47, %v329_v49  ;;  %v409_v52 = vmul.f32 %v329_v49, %v329_v49  ;;  %v423_v53 = vadd.f32 %v422_v45, %v408_v44  ;;  %v417_v11 = vmul.f32 %v369_v50, %v369_v50 }
  0xfe   : > { %v385_v55 = vadd.f32 %v535_v46, %v384_v51  ;;  %v424_v56 = vadd.f32 %v423_v53, %v409_v52 }
 0x100   : > { %v425_v58 = vadd.f32 %v424_v56, %v410_v54  ;;  %v386_v59 = vadd.f32 %v385_v55, %v339_v24 }
 0x102   : > { %v426_v61 = vadd.f32 %v425_v58, %v411_v57  ;;  %v387_v62 = vadd.f32 %v538_v21, %v386_v59 }
 0x104   : > { %v388_v0 = vadd.f32 %v387_v62, %v349_v31  ;;  %v427_v1 = vadd.f32 %v426_v61, %v412_v60 }
 0x106   : > { %v428_v3 = vadd.f32 %v427_v1, %v413_v63  ;;  %v389_v4 = vadd.f32 %v541_v29, %v388_v0 }
 0x108   : > { %v390_v6 = vadd.f32 %v389_v4, %v359_v40  ;;  %v429_v7 = vadd.f32 %v428_v3, %v414_v2 }
 0x10a   : > { %v430_v9 = vadd.f32 %v429_v7, %v415_v5  ;;  %v391_v10 = vadd.f32 %v544_v38, %v390_v6 }
 0x10c   : > { %v392_v12 = vadd.f32 %v391_v10, %v369_v50  ;;  %v431_v13 = vadd.f32 %v430_v9, %v416_v8 }
 0x10e   : > { %v393_v15 = vadd.f32 %v547_v48, %v392_v12  ;;  %v432_v16 = vadd.f32 %v431_v13, %v417_v11 }
 0x110   : > { %v394_v17 = vrot.slane %v393_v15, 4  ;;  %v433_v18 = vadd.f32 %v432_v16, %v418_v14 }
 0x112   : > { %v395_v19 = vadd.f32 %v394_v17, %v393_v15  ;;  %v434_v20 = vrot.slane %v433_v18, 4 }
 0x114   : > { %v396_v21 = vrot.slane %v395_v19, 2  ;;  %v435_v22 = vadd.f32 %v434_v20, %v433_v18 }
 0x116   : > { %v397_v23 = vadd.f32 %v396_v21, %v395_v19  ;;  %v436_v24 = vrot.slane %v435_v22, 2 }
 0x118   : > { %v398_v25 = vrot.slane %v397_v23, 1  ;;  %v437_v26 = vadd.f32 %v436_v24, %v435_v22 }
 0x11a   : > { %v399_v28 = vadd.f32 %v398_v25, %v397_v23  ;;  %v438_v29 = vrot.slane %v437_v26, 1 }
 0x11c   : > { %v400_v31 = vadd.f32 %v399_v28, %v378_v27  ;;  %v439_v32 = vadd.f32 %v438_v29, %v437_v26 }
 0x11e   : > { %401 = vst [vmem:[%s670_s2] sm:$0x1] %v400_v31  ;;  %v440_v33 = vadd.f32 %v439_v32, %v402_v30 }
 0x120   : > { %441 = vst [vmem:[%s671_s3] sm:$0x1] %v440_v33 }
 0x121 PF: > { %s14_s12 = sadd.s32 1, %s572_s12  }
 0x122   : > { %p11_p5 = scmp.ge.s32.totalorder %s14_s12, 4  }
 0x124   :  { %13 = sbr.rel (!%p11_p5) target bundleno = 1 (0x1), region = 66 }

</bundles_post_ra>
